<compile_context>
chip_gen: v7x
topology: tpu7x:2x2x1
jax: 0.10.0
libtpu: 0.0.40
codegen_flags: <defaults>
</compile_context>

<pallas_src>
import numpy as np
import jax
import jax.numpy as jnp
from jax import lax
from jax.experimental import pallas as pl
from jax.experimental.pallas import tpu as pltpu

# ---- hyper-params consistent with PolicyNetwork.__init__ (small test config) ----
IN_DIM   = 16
HIDDEN   = 32          # hidden_dim
NHEAD    = 4
HEAD_DIM = HIDDEN // NHEAD
FFN      = 64          # dim_feedforward
NLAYERS  = 2
SEQ      = 8
BATCH    = 2
EPS      = 1e-5        # nn.LayerNorm default eps
H2       = HIDDEN // 2

SLAB_LANES = 128       # lane width of the packed parameter slab


# -------------------------- packed-parameter slab layout --------------------------
def _build_layout():
    """Row layout of the single packed parameter slab.  Every entry starts on an
    8-row (sublane) boundary and lives in lanes [0, cols)."""
    layout = {}
    row = 0

    def add(name, shape):
        nonlocal row
        layout[name] = (row, shape)
        row += -(-shape[0] // 8) * 8            # round rows up to a sublane tile

    add("emb_w1", (IN_DIM, H2)); add("emb_b1", (1, H2))
    add("emb_w2", (H2, HIDDEN)); add("emb_b2", (1, HIDDEN))
    for l in range(NLAYERS):
        p = f"l{l}_"
        add(p + "qw", (HIDDEN, HIDDEN)); add(p + "qb", (1, HIDDEN))
        add(p + "kw", (HIDDEN, HIDDEN)); add(p + "kb", (1, HIDDEN))
        add(p + "vw", (HIDDEN, HIDDEN)); add(p + "vb", (1, HIDDEN))
        add(p + "ow", (HIDDEN, HIDDEN)); add(p + "ob", (1, HIDDEN))
        add(p + "n1w", (1, HIDDEN)); add(p + "n1b", (1, HIDDEN))
        add(p + "l1w", (HIDDEN, FFN)); add(p + "l1b", (1, FFN))
        add(p + "l2w", (FFN, HIDDEN)); add(p + "l2b", (1, HIDDEN))
        add(p + "n2w", (1, HIDDEN)); add(p + "n2b", (1, HIDDEN))
    add("fc_w1", (HIDDEN, H2)); add("fc_b1", (1, H2))
    add("fc_w2", (1, H2)); add("fc_b2", (1, 1))
    add("head_mask", (NHEAD * SEQ, HIDDEN))     # compile-time per-head channel gates
    return layout, row


LAYOUT, SLAB_ROWS = _build_layout()             # SLAB_ROWS = 744 (multiple of 8)


# -------------------------- shared math (kernel + reference path) --------------------------
def _layer_norm2d(x, w, b):
    mu = jnp.mean(x, axis=-1, keepdims=True)
    xc = x - mu
    var = jnp.mean(xc * xc, axis=-1, keepdims=True)
    return xc * lax.rsqrt(var + EPS) * w + b


def _forward_rows(x, get):
    """Forward for ONE batch element.  x: (SEQ, IN_DIM).  `get(name)` returns the
    packed parameter of shape (rows, cols).  Returns sigmoid outputs as a (1, SEQ) row."""
    dot = lambda a, b: jnp.dot(a, b, preferred_element_type=jnp.float32)

    # ---- embedding: Linear -> (Dropout p=0) -> ReLU -> Linear ----
    h = jnp.maximum(dot(x, get("emb_w1")) + get("emb_b1"), 0.0)
    h = dot(h, get("emb_w2")) + get("emb_b2")                       # (SEQ, HIDDEN)

    mask_big = get("head_mask")                                     # (NHEAD*SEQ, HIDDEN)

    # ---- TransformerEncoder: NLAYERS post-LN encoder layers, ReLU FFN ----
    for l in range(NLAYERS):
        pref = f"l{l}_"
        q = dot(h, get(pref + "qw")) + get(pref + "qb")             # 1/sqrt(hd) pre-folded
        k = dot(h, get(pref + "kw")) + get(pref + "kb")
        v = dot(h, get(pref + "vw")) + get(pref + "vb")

        # all-head scores stacked on sublanes: rows [hh*SEQ, (hh+1)*SEQ) = head hh
        q_big = jnp.concatenate([q] * NHEAD, axis=0) * mask_big     # (NHEAD*SEQ, HIDDEN)
        s = lax.dot_general(q_big, k, (((1,), (1,)), ((), ())),
                            preferred_element_type=jnp.float32)     # (NHEAD*SEQ, SEQ)
        e = jnp.exp(s - jnp.max(s, axis=-1, keepdims=True))
        p_att = e / jnp.sum(e, axis=-1, keepdims=True)              # ONE fused softmax

        attn = jnp.zeros((SEQ, HIDDEN), jnp.float32)
        for hh in range(NHEAD):                                     # 4 PV dots, row slices
            attn = attn + dot(p_att[hh * SEQ:(hh + 1) * SEQ],
                              v * mask_big[hh * SEQ:hh * SEQ + 1, :])
        attn = dot(attn, get(pref + "ow")) + get(pref + "ob")
        h = _layer_norm2d(h + attn, get(pref + "n1w"), get(pref + "n1b"))

        ff = jnp.maximum(dot(h, get(pref + "l1w")) + get(pref + "l1b"), 0.0)
        ff = dot(ff, get(pref + "l2w")) + get(pref + "l2b")
        h = _layer_norm2d(h + ff, get(pref + "n2w"), get(pref + "n2b"))

    # ---- fc head: Linear -> (Dropout p=0) -> ReLU -> Linear(->1) -> Sigmoid ----
    z = jnp.maximum(dot(h, get("fc_w1")) + get("fc_b1"), 0.0)       # (SEQ, H2)
    # lane-dense logits: (1, SEQ) row via contraction on the last dim of both operands
    logit = lax.dot_general(get("fc_w2"), z, (((1,), (1,)), ((), ())),
                            preferred_element_type=jnp.float32) + get("fc_b2")
    return 1.0 / (1.0 + jnp.exp(-logit))                            # exact sigmoid, (1, SEQ)


# -------------------------------- Pallas kernel --------------------------------
def policy_kernel(x_ref, slab_ref, out_ref):
    def get(name):
        r, (rows, cols) = LAYOUT[name]
        return slab_ref[r:r + rows, 0:cols]                         # static VMEM slices
    out_ref[...] = _forward_rows(x_ref[0], get).reshape(1, 1, SEQ)


def policy_forward(data, slab):
    """data: (S, B, IN_DIM) as in PyTorch (batch_first=False).  Returns (S, B)."""
    x = jnp.transpose(data, (1, 0, 2)).astype(jnp.float32)          # (B, S, IN)
    out = pl.pallas_call(
        policy_kernel,
        out_shape=jax.ShapeDtypeStruct((BATCH, 1, SEQ), jnp.float32),
        grid_spec=pltpu.PrefetchScalarGridSpec(
            num_scalar_prefetch=0,
            grid=(BATCH,),
            in_specs=[pl.BlockSpec((1, SEQ, IN_DIM), lambda b: (b, 0, 0)),
                      # constant block index -> the slab is DMA'd only once
                      pl.BlockSpec((SLAB_ROWS, SLAB_LANES), lambda b: (0, 0))],
            out_specs=pl.BlockSpec((1, 1, SEQ), lambda b: (b, 0, 0)),
        ),
        compiler_params=pltpu.CompilerParams(
            dimension_semantics=("parallel",)),     # v7x: one batch element per TensorCore
    )(x, slab)
    return out.reshape(BATCH, SEQ).T                                # (S, B)


# ---------------------- host-side parameter packing (done once) ----------------------
def pack_params(params):
    """PyTorch-convention params -> one pre-transposed, 8-row-aligned f32 slab."""
    (emb_w1, emb_b1, emb_w2, emb_b2,
     inproj_w, inproj_b, outproj_w, outproj_b,
     lin1_w, lin1_b, lin2_w, lin2_b,
     norm1_w, norm1_b, norm2_w, norm2_b,
     fc_w1, fc_b1, fc_w2, fc_b2) = params
    f = lambda a: np.asarray(a, np.float32)
    scale = 1.0 / float(HEAD_DIM) ** 0.5

    entries = {
        "emb_w1": f(emb_w1).T, "emb_b1": f(emb_b1).reshape(1, H2),
        "emb_w2": f(emb_w2).T, "emb_b2": f(emb_b2).reshape(1, HIDDEN),
        "fc_w1": f(fc_w1).T, "fc_b1": f(fc_b1).reshape(1, H2),
        "fc_w2": f(fc_w2).reshape(1, H2), "fc_b2": f(fc_b2).reshape(1, 1),
    }
    for l in range(NLAYERS):
        w, b = f(inproj_w[l]), f(inproj_b[l])
        p = f"l{l}_"
        entries.update({
            p + "qw": (w[0:HIDDEN] * scale).T,
            p + "qb": (b[0:HIDDEN] * scale).reshape(1, HIDDEN),
            p + "kw": w[HIDDEN:2 * HIDDEN].T,
            p + "kb": b[HIDDEN:2 * HIDDEN].reshape(1, HIDDEN),
            p + "vw": w[2 * HIDDEN:3 * HIDDEN].T,
            p + "vb": b[2 * HIDDEN:3 * HIDDEN].reshape(1, HIDDEN),
            p + "ow": f(outproj_w[l]).T,
            p + "ob": f(outproj_b[l]).reshape(1, HIDDEN),
            p + "n1w": f(norm1_w[l]).reshape(1, HIDDEN),
            p + "n1b": f(norm1_b[l]).reshape(1, HIDDEN),
            p + "l1w": f(lin1_w[l]).T,
            p + "l1b": f(lin1_b[l]).reshape(1, FFN),
            p + "l2w": f(lin2_w[l]).T,
            p + "l2b": f(lin2_b[l]).reshape(1, HIDDEN),
            p + "n2w": f(norm2_w[l]).reshape(1, HIDDEN),
            p + "n2b": f(norm2_b[l]).reshape(1, HIDDEN),
        })

    # compile-time per-head channel gates, replicated SEQ rows per head
    ch = np.arange(HIDDEN)[None, :]
    entries["head_mask"] = np.concatenate(
        [np.broadcast_to((ch // HEAD_DIM == hh).astype(np.float32), (SEQ, HIDDEN))
         for hh in range(NHEAD)], axis=0)

    slab = np.zeros((SLAB_ROWS, SLAB_LANES), np.float32)
    for name, (row, shape) in LAYOUT.items():
        val = entries[name]
        assert val.shape == shape, (name, val.shape, shape)
        slab[row:row + shape[0], 0:shape[1]] = val
    return jnp.asarray(slab)


# -------------------- pure-JAX evaluation of the exact kernel math --------------------
def _forward_opt_jax(x_bsd, slab):
    def get(name):
        r, (rows, cols) = LAYOUT[name]
        return slab[r:r + rows, 0:cols]
    return jnp.concatenate([_forward_rows(x_bsd[b], get) for b in range(BATCH)], axis=0)


# -------------------- PyTorch-faithful pure-JAX reference (no Pallas) --------------------
def _torch_reference(x, params):
    """x: (B, S, IN_DIM) -> (B, S).  Mirrors nn.TransformerEncoderLayer (post-LN, ReLU)."""
    (emb_w1, emb_b1, emb_w2, emb_b2,
     inproj_w, inproj_b, outproj_w, outproj_b,
     lin1_w, lin1_b, lin2_w, lin2_b,
     norm1_w, norm1_b, norm2_w, norm2_b,
     fc_w1, fc_b1, fc_w2, fc_b2) = params

    def ln(t, w, b):
        mu = jnp.mean(t, -1, keepdims=True)
        tc = t - mu
        var = jnp.mean(tc * tc, -1, keepdims=True)
        return tc * lax.rsqrt(var + EPS) * w + b

    hp = "highest"
    h = jnp.maximum(jnp.einsum('bsi,hi->bsh', x, emb_w1, precision=hp) + emb_b1, 0.0)
    h = jnp.einsum('bsh,dh->bsd', h, emb_w2, precision=hp) + emb_b2
    scale = 1.0 / jnp.sqrt(jnp.float32(HEAD_DIM))
    for l in range(NLAYERS):
        qkv = jnp.einsum('bsd,ed->bse', h, inproj_w[l], precision=hp) + inproj_b[l]
        q, k, v = (qkv[..., i * HIDDEN:(i + 1) * HIDDEN] for i in range(3))
        heads = []
        for hh in range(NHEAD):
            sl = slice(hh * HEAD_DIM, (hh + 1) * HEAD_DIM)
            s = jnp.einsum('bqd,bkd->bqk', q[..., sl], k[..., sl], precision=hp) * scale
            p = jax.nn.softmax(s, axis=-1)
            heads.append(jnp.einsum('bqk,bkd->bqd', p, v[..., sl], precision=hp))
        attn = jnp.concatenate(heads, axis=-1)
        attn = jnp.einsum('bsd,ed->bse', attn, outproj_w[l], precision=hp) + outproj_b[l]
        h = ln(h + attn, norm1_w[l], norm1_b[l])
        ff = jnp.maximum(jnp.einsum('bsd,fd->bsf', h, lin1_w[l], precision=hp) + lin1_b[l], 0.0)
        ff = jnp.einsum('bsf,df->bsd', ff, lin2_w[l], precision=hp) + lin2_b[l]
        h = ln(h + ff, norm2_w[l], norm2_b[l])
    z = jnp.maximum(jnp.einsum('bsd,hd->bsh', h, fc_w1, precision=hp) + fc_b1, 0.0)
    logit = jnp.einsum('bsh,oh->bso', z, fc_w2, precision=hp) + fc_b2
    return jax.nn.sigmoid(logit[..., 0])              # (B, S)


# ------------------------------ deterministic params ------------------------------
def init_params(key):
    ks = iter(jax.random.split(key, 24))

    def rnd(shape, scl=0.1):
        return scl * jax.random.normal(next(ks), shape, jnp.float32)

    return [
        rnd((H2, IN_DIM)), rnd((H2,)),                                     # embedding[0]
        rnd((HIDDEN, H2)), rnd((HIDDEN,)),                                 # embedding[3]
        rnd((NLAYERS, 3 * HIDDEN, HIDDEN)), rnd((NLAYERS, 3 * HIDDEN)),    # attn in_proj
        rnd((NLAYERS, HIDDEN, HIDDEN)), rnd((NLAYERS, HIDDEN)),            # attn out_proj
        rnd((NLAYERS, FFN, HIDDEN)), rnd((NLAYERS, FFN)),                  # linear1
        rnd((NLAYERS, HIDDEN, FFN)), rnd((NLAYERS, HIDDEN)),               # linear2
        1.0 + rnd((NLAYERS, HIDDEN)), rnd((NLAYERS, HIDDEN)),              # norm1 w, b
        1.0 + rnd((NLAYERS, HIDDEN)), rnd((NLAYERS, HIDDEN)),              # norm2 w, b
        rnd((H2, HIDDEN)), rnd((H2,)),                                     # fc[0]
        rnd((1, H2)), rnd((1,)),                                           # fc[3]
    ]


if __name__ == "__main__":
    root = jax.random.PRNGKey(0)
    k_data, k_params = jax.random.split(root)

    data = jax.random.normal(k_data, (SEQ, BATCH, IN_DIM), jnp.float32)
    params = init_params(k_params)

    slab = pack_params(params)                        # host-side packing, done once
    out = jax.block_until_ready(jax.jit(policy_forward)(data, slab))
    assert out.shape == (SEQ, BATCH), out.shape

    x_bsd = jnp.transpose(data, (1, 0, 2))
    with jax.default_matmul_precision("float32"):
        ref = _torch_reference(x_bsd, params).T                       # (S, B)
        # (1) kernel math (packed-slab carving, folded scale, fused-head softmax,
        #     lane-dense logits) evaluated in pure JAX vs the PyTorch-style reference.
        opt = _forward_opt_jax(x_bsd, slab).T                         # (S, B)
    assert jnp.allclose(opt, ref, atol=1e-4, rtol=1e-4), \
        float(jnp.max(jnp.abs(opt - ref)))

    # (2) Pallas kernel vs reference.  Softmax/sigmoid now use exact division (no
    #     approx reciprocal); the small remaining slack only covers MXU f32 pass
    #     configuration / transcendental differences on-chip.
    assert jnp.allclose(out, ref, atol=2e-3, rtol=2e-3), \
        float(jnp.max(jnp.abs(out - ref)))

    print("KERNEL_OK")
</pallas_src>

<mosaic_0001>
module attributes {stable_mosaic.version = 11 : i64} {
  func.func @policy_kernel(%arg0: i32, %arg1: memref<1x8x16xf32, #tpu.memory_space<vmem>>, %arg2: memref<744x128xf32, #tpu.memory_space<vmem>>, %arg3: memref<1x1x8xf32, #tpu.memory_space<vmem>>) attributes {dimension_semantics = [#tpu.dimension_semantics<parallel>], iteration_bounds = array<i64: 2>, scalar_prefetch = 0 : i64, scratch_operands = 0 : i64, tpu.core_type = #tpu.core_type<tc>, window_params = [{transform_indices = @transform_0, window_bounds = array<i64: 1, 8, 16>}, {pipeline_mode = #tpu.pipeline_mode<synchronous>, transform_indices = @transform_1, window_bounds = array<i64: 744, 128>}, {transform_indices = @transform_2, window_bounds = array<i64: 1, 1, 8>}]} {
    %c0 = arith.constant 0 : index
    %c0_0 = arith.constant 0 : index
    %c0_1 = arith.constant 0 : index
    %0 = vector.load %arg1[%c0, %c0_0, %c0_1] : memref<1x8x16xf32, #tpu.memory_space<vmem>>, vector<1x8x16xf32>
    %1 = vector.shape_cast %0 : vector<1x8x16xf32> to vector<8x16xf32>
    %c0_2 = arith.constant 0 : index
    %c0_3 = arith.constant 0 : index
    %2 = vector.load %arg2[%c0_2, %c0_3] : memref<744x128xf32, #tpu.memory_space<vmem>>, vector<16x16xf32>
    %cst = arith.constant dense<0.000000e+00> : vector<8x16xf32>
    %3 = tpu.matmul %1, %2, %cst {dimension_numbers = #tpu.dot_dimension_numbers<[1], [0], [0], [1], [0, 0, 1, 1], [], []>} : vector<8x16xf32>, vector<16x16xf32>, vector<8x16xf32> -> vector<8x16xf32>
    %c16 = arith.constant 16 : index
    %c0_4 = arith.constant 0 : index
    %4 = vector.load %arg2[%c16, %c0_4] : memref<744x128xf32, #tpu.memory_space<vmem>>, vector<1x16xf32>
    %5 = vector.broadcast %4 : vector<1x16xf32> to vector<8x16xf32>
    %6 = arith.addf %3, %5 : vector<8x16xf32>
    %cst_5 = arith.constant 0.000000e+00 : f32
    %7 = vector.broadcast %cst_5 : f32 to vector<8x16xf32>
    %8 = arith.maximumf %6, %7 : vector<8x16xf32>
    %c24 = arith.constant 24 : index
    %c0_6 = arith.constant 0 : index
    %9 = vector.load %arg2[%c24, %c0_6] : memref<744x128xf32, #tpu.memory_space<vmem>>, vector<16x32xf32>
    %cst_7 = arith.constant dense<0.000000e+00> : vector<8x32xf32>
    %10 = tpu.matmul %8, %9, %cst_7 {dimension_numbers = #tpu.dot_dimension_numbers<[1], [0], [0], [1], [0, 0, 1, 1], [], []>} : vector<8x16xf32>, vector<16x32xf32>, vector<8x32xf32> -> vector<8x32xf32>
    %c40 = arith.constant 40 : index
    %c0_8 = arith.constant 0 : index
    %11 = vector.load %arg2[%c40, %c0_8] : memref<744x128xf32, #tpu.memory_space<vmem>>, vector<1x32xf32>
    %12 = vector.broadcast %11 : vector<1x32xf32> to vector<8x32xf32>
    %13 = arith.addf %10, %12 : vector<8x32xf32>
    %c712 = arith.constant 712 : index
    %c0_9 = arith.constant 0 : index
    %14 = vector.load %arg2[%c712, %c0_9] : memref<744x128xf32, #tpu.memory_space<vmem>>, vector<32x32xf32>
    %c48 = arith.constant 48 : index
    %c0_10 = arith.constant 0 : index
    %15 = vector.load %arg2[%c48, %c0_10] : memref<744x128xf32, #tpu.memory_space<vmem>>, vector<32x32xf32>
    %cst_11 = arith.constant dense<0.000000e+00> : vector<8x32xf32>
    %16 = tpu.matmul %13, %15, %cst_11 {dimension_numbers = #tpu.dot_dimension_numbers<[1], [0], [0], [1], [0, 0, 1, 1], [], []>} : vector<8x32xf32>, vector<32x32xf32>, vector<8x32xf32> -> vector<8x32xf32>
    %c80 = arith.constant 80 : index
    %c0_12 = arith.constant 0 : index
    %17 = vector.load %arg2[%c80, %c0_12] : memref<744x128xf32, #tpu.memory_space<vmem>>, vector<1x32xf32>
    %18 = vector.broadcast %17 : vector<1x32xf32> to vector<8x32xf32>
    %19 = arith.addf %16, %18 : vector<8x32xf32>
    %c88 = arith.constant 88 : index
    %c0_13 = arith.constant 0 : index
    %20 = vector.load %arg2[%c88, %c0_13] : memref<744x128xf32, #tpu.memory_space<vmem>>, vector<32x32xf32>
    %cst_14 = arith.constant dense<0.000000e+00> : vector<8x32xf32>
    %21 = tpu.matmul %13, %20, %cst_14 {dimension_numbers = #tpu.dot_dimension_numbers<[1], [0], [0], [1], [0, 0, 1, 1], [], []>} : vector<8x32xf32>, vector<32x32xf32>, vector<8x32xf32> -> vector<8x32xf32>
    %c120 = arith.constant 120 : index
    %c0_15 = arith.constant 0 : index
    %22 = vector.load %arg2[%c120, %c0_15] : memref<744x128xf32, #tpu.memory_space<vmem>>, vector<1x32xf32>
    %23 = vector.broadcast %22 : vector<1x32xf32> to vector<8x32xf32>
    %24 = arith.addf %21, %23 : vector<8x32xf32>
    %c128 = arith.constant 128 : index
    %c0_16 = arith.constant 0 : index
    %25 = vector.load %arg2[%c128, %c0_16] : memref<744x128xf32, #tpu.memory_space<vmem>>, vector<32x32xf32>
    %cst_17 = arith.constant dense<0.000000e+00> : vector<8x32xf32>
    %26 = tpu.matmul %13, %25, %cst_17 {dimension_numbers = #tpu.dot_dimension_numbers<[1], [0], [0], [1], [0, 0, 1, 1], [], []>} : vector<8x32xf32>, vector<32x32xf32>, vector<8x32xf32> -> vector<8x32xf32>
    %c160 = arith.constant 160 : index
    %c0_18 = arith.constant 0 : index
    %27 = vector.load %arg2[%c160, %c0_18] : memref<744x128xf32, #tpu.memory_space<vmem>>, vector<1x32xf32>
    %28 = vector.broadcast %27 : vector<1x32xf32> to vector<8x32xf32>
    %29 = arith.addf %26, %28 : vector<8x32xf32>
    %30 = tpu.concatenate %19, %19, %19, %19 in 0 : vector<8x32xf32>, vector<8x32xf32>, vector<8x32xf32>, vector<8x32xf32> -> vector<32x32xf32>
    %31 = arith.mulf %30, %14 : vector<32x32xf32>
    %cst_19 = arith.constant dense<0.000000e+00> : vector<32x8xf32>
    %32 = tpu.matmul %31, %24, %cst_19 {dimension_numbers = #tpu.dot_dimension_numbers<[1], [1], [0], [0], [0, 0, 1, 0], [], []>} : vector<32x32xf32>, vector<8x32xf32>, vector<32x8xf32> -> vector<32x8xf32>
    %cst_20 = arith.constant dense<0xFF800000> : vector<32xf32>
    %33 = vector.multi_reduction <maximumf>, %32, %cst_20 [1] : vector<32x8xf32> to vector<32xf32>
    %34 = vector.shape_cast %33 : vector<32xf32> to vector<32x1xf32>
    %35 = vector.broadcast %34 : vector<32x1xf32> to vector<32x8xf32>
    %36 = arith.subf %32, %35 : vector<32x8xf32>
    %37 = math.exp %36 : vector<32x8xf32>
    %cst_21 = arith.constant dense<0.000000e+00> : vector<32xf32>
    %38 = vector.multi_reduction <add>, %37, %cst_21 [1] : vector<32x8xf32> to vector<32xf32>
    %39 = vector.shape_cast %38 : vector<32xf32> to vector<32x1xf32>
    %40 = vector.broadcast %39 : vector<32x1xf32> to vector<32x8xf32>
    %41 = arith.divf %37, %40 : vector<32x8xf32>
    %cst_22 = arith.constant 0.000000e+00 : f32
    %42 = vector.broadcast %cst_22 : f32 to vector<8x32xf32>
    %43 = vector.extract_strided_slice %41 {offsets = [0, 0], sizes = [8, 8], strides = [1, 1]} : vector<32x8xf32> to vector<8x8xf32>
    %44 = vector.extract_strided_slice %14 {offsets = [0, 0], sizes = [1, 32], strides = [1, 1]} : vector<32x32xf32> to vector<1x32xf32>
    %45 = vector.broadcast %44 : vector<1x32xf32> to vector<8x32xf32>
    %46 = arith.mulf %29, %45 : vector<8x32xf32>
    %cst_23 = arith.constant dense<0.000000e+00> : vector<8x32xf32>
    %47 = tpu.matmul %43, %46, %cst_23 {dimension_numbers = #tpu.dot_dimension_numbers<[1], [0], [0], [1], [0, 0, 1, 1], [], []>} : vector<8x8xf32>, vector<8x32xf32>, vector<8x32xf32> -> vector<8x32xf32>
    %48 = arith.addf %42, %47 : vector<8x32xf32>
    %49 = vector.extract_strided_slice %41 {offsets = [8, 0], sizes = [8, 8], strides = [1, 1]} : vector<32x8xf32> to vector<8x8xf32>
    %50 = vector.extract_strided_slice %14 {offsets = [8, 0], sizes = [1, 32], strides = [1, 1]} : vector<32x32xf32> to vector<1x32xf32>
    %51 = vector.broadcast %50 : vector<1x32xf32> to vector<8x32xf32>
    %52 = arith.mulf %29, %51 : vector<8x32xf32>
    %cst_24 = arith.constant dense<0.000000e+00> : vector<8x32xf32>
    %53 = tpu.matmul %49, %52, %cst_24 {dimension_numbers = #tpu.dot_dimension_numbers<[1], [0], [0], [1], [0, 0, 1, 1], [], []>} : vector<8x8xf32>, vector<8x32xf32>, vector<8x32xf32> -> vector<8x32xf32>
    %54 = arith.addf %48, %53 : vector<8x32xf32>
    %55 = vector.extract_strided_slice %41 {offsets = [16, 0], sizes = [8, 8], strides = [1, 1]} : vector<32x8xf32> to vector<8x8xf32>
    %56 = vector.extract_strided_slice %14 {offsets = [16, 0], sizes = [1, 32], strides = [1, 1]} : vector<32x32xf32> to vector<1x32xf32>
    %57 = vector.broadcast %56 : vector<1x32xf32> to vector<8x32xf32>
    %58 = arith.mulf %29, %57 : vector<8x32xf32>
    %cst_25 = arith.constant dense<0.000000e+00> : vector<8x32xf32>
    %59 = tpu.matmul %55, %58, %cst_25 {dimension_numbers = #tpu.dot_dimension_numbers<[1], [0], [0], [1], [0, 0, 1, 1], [], []>} : vector<8x8xf32>, vector<8x32xf32>, vector<8x32xf32> -> vector<8x32xf32>
    %60 = arith.addf %54, %59 : vector<8x32xf32>
    %61 = vector.extract_strided_slice %41 {offsets = [24, 0], sizes = [8, 8], strides = [1, 1]} : vector<32x8xf32> to vector<8x8xf32>
    %62 = vector.extract_strided_slice %14 {offsets = [24, 0], sizes = [1, 32], strides = [1, 1]} : vector<32x32xf32> to vector<1x32xf32>
    %63 = vector.broadcast %62 : vector<1x32xf32> to vector<8x32xf32>
    %64 = arith.mulf %29, %63 : vector<8x32xf32>
    %cst_26 = arith.constant dense<0.000000e+00> : vector<8x32xf32>
    %65 = tpu.matmul %61, %64, %cst_26 {dimension_numbers = #tpu.dot_dimension_numbers<[1], [0], [0], [1], [0, 0, 1, 1], [], []>} : vector<8x8xf32>, vector<8x32xf32>, vector<8x32xf32> -> vector<8x32xf32>
    %66 = arith.addf %60, %65 : vector<8x32xf32>
    %c168 = arith.constant 168 : index
    %c0_27 = arith.constant 0 : index
    %67 = vector.load %arg2[%c168, %c0_27] : memref<744x128xf32, #tpu.memory_space<vmem>>, vector<32x32xf32>
    %cst_28 = arith.constant dense<0.000000e+00> : vector<8x32xf32>
    %68 = tpu.matmul %66, %67, %cst_28 {dimension_numbers = #tpu.dot_dimension_numbers<[1], [0], [0], [1], [0, 0, 1, 1], [], []>} : vector<8x32xf32>, vector<32x32xf32>, vector<8x32xf32> -> vector<8x32xf32>
    %c200 = arith.constant 200 : index
    %c0_29 = arith.constant 0 : index
    %69 = vector.load %arg2[%c200, %c0_29] : memref<744x128xf32, #tpu.memory_space<vmem>>, vector<1x32xf32>
    %70 = vector.broadcast %69 : vector<1x32xf32> to vector<8x32xf32>
    %71 = arith.addf %68, %70 : vector<8x32xf32>
    %72 = arith.addf %13, %71 : vector<8x32xf32>
    %c208 = arith.constant 208 : index
    %c0_30 = arith.constant 0 : index
    %73 = vector.load %arg2[%c208, %c0_30] : memref<744x128xf32, #tpu.memory_space<vmem>>, vector<1x32xf32>
    %c216 = arith.constant 216 : index
    %c0_31 = arith.constant 0 : index
    %74 = vector.load %arg2[%c216, %c0_31] : memref<744x128xf32, #tpu.memory_space<vmem>>, vector<1x32xf32>
    %cst_32 = arith.constant dense<0.000000e+00> : vector<8xf32>
    %75 = vector.multi_reduction <add>, %72, %cst_32 [1] : vector<8x32xf32> to vector<8xf32>
    %76 = vector.shape_cast %75 : vector<8xf32> to vector<8x1xf32>
    %cst_33 = arith.constant 3.200000e+01 : f32
    %77 = vector.broadcast %cst_33 : f32 to vector<8x1xf32>
    %78 = arith.divf %76, %77 : vector<8x1xf32>
    %79 = vector.broadcast %78 : vector<8x1xf32> to vector<8x32xf32>
    %80 = arith.subf %72, %79 : vector<8x32xf32>
    %81 = arith.mulf %80, %80 : vector<8x32xf32>
    %cst_34 = arith.constant dense<0.000000e+00> : vector<8xf32>
    %82 = vector.multi_reduction <add>, %81, %cst_34 [1] : vector<8x32xf32> to vector<8xf32>
    %83 = vector.shape_cast %82 : vector<8xf32> to vector<8x1xf32>
    %cst_35 = arith.constant 3.200000e+01 : f32
    %84 = vector.broadcast %cst_35 : f32 to vector<8x1xf32>
    %85 = arith.divf %83, %84 : vector<8x1xf32>
    %cst_36 = arith.constant 9.99999974E-6 : f32
    %86 = vector.broadcast %cst_36 : f32 to vector<8x1xf32>
    %87 = arith.addf %85, %86 : vector<8x1xf32>
    %88 = math.rsqrt %87 : vector<8x1xf32>
    %89 = vector.broadcast %88 : vector<8x1xf32> to vector<8x32xf32>
    %90 = arith.mulf %80, %89 : vector<8x32xf32>
    %91 = vector.broadcast %73 : vector<1x32xf32> to vector<8x32xf32>
    %92 = arith.mulf %90, %91 : vector<8x32xf32>
    %93 = vector.broadcast %74 : vector<1x32xf32> to vector<8x32xf32>
    %94 = arith.addf %92, %93 : vector<8x32xf32>
    %c224 = arith.constant 224 : index
    %c0_37 = arith.constant 0 : index
    %95 = vector.load %arg2[%c224, %c0_37] : memref<744x128xf32, #tpu.memory_space<vmem>>, vector<32x64xf32>
    %cst_38 = arith.constant dense<0.000000e+00> : vector<8x64xf32>
    %96 = tpu.matmul %94, %95, %cst_38 {dimension_numbers = #tpu.dot_dimension_numbers<[1], [0], [0], [1], [0, 0, 1, 1], [], []>} : vector<8x32xf32>, vector<32x64xf32>, vector<8x64xf32> -> vector<8x64xf32>
    %c256 = arith.constant 256 : index
    %c0_39 = arith.constant 0 : index
    %97 = vector.load %arg2[%c256, %c0_39] : memref<744x128xf32, #tpu.memory_space<vmem>>, vector<1x64xf32>
    %98 = vector.broadcast %97 : vector<1x64xf32> to vector<8x64xf32>
    %99 = arith.addf %96, %98 : vector<8x64xf32>
    %cst_40 = arith.constant 0.000000e+00 : f32
    %100 = vector.broadcast %cst_40 : f32 to vector<8x64xf32>
    %101 = arith.maximumf %99, %100 : vector<8x64xf32>
    %c264 = arith.constant 264 : index
    %c0_41 = arith.constant 0 : index
    %102 = vector.load %arg2[%c264, %c0_41] : memref<744x128xf32, #tpu.memory_space<vmem>>, vector<64x32xf32>
    %cst_42 = arith.constant dense<0.000000e+00> : vector<8x32xf32>
    %103 = tpu.matmul %101, %102, %cst_42 {dimension_numbers = #tpu.dot_dimension_numbers<[1], [0], [0], [1], [0, 0, 1, 1], [], []>} : vector<8x64xf32>, vector<64x32xf32>, vector<8x32xf32> -> vector<8x32xf32>
    %c328 = arith.constant 328 : index
    %c0_43 = arith.constant 0 : index
    %104 = vector.load %arg2[%c328, %c0_43] : memref<744x128xf32, #tpu.memory_space<vmem>>, vector<1x32xf32>
    %105 = vector.broadcast %104 : vector<1x32xf32> to vector<8x32xf32>
    %106 = arith.addf %103, %105 : vector<8x32xf32>
    %107 = arith.addf %94, %106 : vector<8x32xf32>
    %c336 = arith.constant 336 : index
    %c0_44 = arith.constant 0 : index
    %108 = vector.load %arg2[%c336, %c0_44] : memref<744x128xf32, #tpu.memory_space<vmem>>, vector<1x32xf32>
    %c344 = arith.constant 344 : index
    %c0_45 = arith.constant 0 : index
    %109 = vector.load %arg2[%c344, %c0_45] : memref<744x128xf32, #tpu.memory_space<vmem>>, vector<1x32xf32>
    %cst_46 = arith.constant dense<0.000000e+00> : vector<8xf32>
    %110 = vector.multi_reduction <add>, %107, %cst_46 [1] : vector<8x32xf32> to vector<8xf32>
    %111 = vector.shape_cast %110 : vector<8xf32> to vector<8x1xf32>
    %cst_47 = arith.constant 3.200000e+01 : f32
    %112 = vector.broadcast %cst_47 : f32 to vector<8x1xf32>
    %113 = arith.divf %111, %112 : vector<8x1xf32>
    %114 = vector.broadcast %113 : vector<8x1xf32> to vector<8x32xf32>
    %115 = arith.subf %107, %114 : vector<8x32xf32>
    %116 = arith.mulf %115, %115 : vector<8x32xf32>
    %cst_48 = arith.constant dense<0.000000e+00> : vector<8xf32>
    %117 = vector.multi_reduction <add>, %116, %cst_48 [1] : vector<8x32xf32> to vector<8xf32>
    %118 = vector.shape_cast %117 : vector<8xf32> to vector<8x1xf32>
    %cst_49 = arith.constant 3.200000e+01 : f32
    %119 = vector.broadcast %cst_49 : f32 to vector<8x1xf32>
    %120 = arith.divf %118, %119 : vector<8x1xf32>
    %cst_50 = arith.constant 9.99999974E-6 : f32
    %121 = vector.broadcast %cst_50 : f32 to vector<8x1xf32>
    %122 = arith.addf %120, %121 : vector<8x1xf32>
    %123 = math.rsqrt %122 : vector<8x1xf32>
    %124 = vector.broadcast %123 : vector<8x1xf32> to vector<8x32xf32>
    %125 = arith.mulf %115, %124 : vector<8x32xf32>
    %126 = vector.broadcast %108 : vector<1x32xf32> to vector<8x32xf32>
    %127 = arith.mulf %125, %126 : vector<8x32xf32>
    %128 = vector.broadcast %109 : vector<1x32xf32> to vector<8x32xf32>
    %129 = arith.addf %127, %128 : vector<8x32xf32>
    %c352 = arith.constant 352 : index
    %c0_51 = arith.constant 0 : index
    %130 = vector.load %arg2[%c352, %c0_51] : memref<744x128xf32, #tpu.memory_space<vmem>>, vector<32x32xf32>
    %cst_52 = arith.constant dense<0.000000e+00> : vector<8x32xf32>
    %131 = tpu.matmul %129, %130, %cst_52 {dimension_numbers = #tpu.dot_dimension_numbers<[1], [0], [0], [1], [0, 0, 1, 1], [], []>} : vector<8x32xf32>, vector<32x32xf32>, vector<8x32xf32> -> vector<8x32xf32>
    %c384 = arith.constant 384 : index
    %c0_53 = arith.constant 0 : index
    %132 = vector.load %arg2[%c384, %c0_53] : memref<744x128xf32, #tpu.memory_space<vmem>>, vector<1x32xf32>
    %133 = vector.broadcast %132 : vector<1x32xf32> to vector<8x32xf32>
    %134 = arith.addf %131, %133 : vector<8x32xf32>
    %c392 = arith.constant 392 : index
    %c0_54 = arith.constant 0 : index
    %135 = vector.load %arg2[%c392, %c0_54] : memref<744x128xf32, #tpu.memory_space<vmem>>, vector<32x32xf32>
    %cst_55 = arith.constant dense<0.000000e+00> : vector<8x32xf32>
    %136 = tpu.matmul %129, %135, %cst_55 {dimension_numbers = #tpu.dot_dimension_numbers<[1], [0], [0], [1], [0, 0, 1, 1], [], []>} : vector<8x32xf32>, vector<32x32xf32>, vector<8x32xf32> -> vector<8x32xf32>
    %c424 = arith.constant 424 : index
    %c0_56 = arith.constant 0 : index
    %137 = vector.load %arg2[%c424, %c0_56] : memref<744x128xf32, #tpu.memory_space<vmem>>, vector<1x32xf32>
    %138 = vector.broadcast %137 : vector<1x32xf32> to vector<8x32xf32>
    %139 = arith.addf %136, %138 : vector<8x32xf32>
    %c432 = arith.constant 432 : index
    %c0_57 = arith.constant 0 : index
    %140 = vector.load %arg2[%c432, %c0_57] : memref<744x128xf32, #tpu.memory_space<vmem>>, vector<32x32xf32>
    %cst_58 = arith.constant dense<0.000000e+00> : vector<8x32xf32>
    %141 = tpu.matmul %129, %140, %cst_58 {dimension_numbers = #tpu.dot_dimension_numbers<[1], [0], [0], [1], [0, 0, 1, 1], [], []>} : vector<8x32xf32>, vector<32x32xf32>, vector<8x32xf32> -> vector<8x32xf32>
    %c464 = arith.constant 464 : index
    %c0_59 = arith.constant 0 : index
    %142 = vector.load %arg2[%c464, %c0_59] : memref<744x128xf32, #tpu.memory_space<vmem>>, vector<1x32xf32>
    %143 = vector.broadcast %142 : vector<1x32xf32> to vector<8x32xf32>
    %144 = arith.addf %141, %143 : vector<8x32xf32>
    %145 = tpu.concatenate %134, %134, %134, %134 in 0 : vector<8x32xf32>, vector<8x32xf32>, vector<8x32xf32>, vector<8x32xf32> -> vector<32x32xf32>
    %146 = arith.mulf %145, %14 : vector<32x32xf32>
    %cst_60 = arith.constant dense<0.000000e+00> : vector<32x8xf32>
    %147 = tpu.matmul %146, %139, %cst_60 {dimension_numbers = #tpu.dot_dimension_numbers<[1], [1], [0], [0], [0, 0, 1, 0], [], []>} : vector<32x32xf32>, vector<8x32xf32>, vector<32x8xf32> -> vector<32x8xf32>
    %cst_61 = arith.constant dense<0xFF800000> : vector<32xf32>
    %148 = vector.multi_reduction <maximumf>, %147, %cst_61 [1] : vector<32x8xf32> to vector<32xf32>
    %149 = vector.shape_cast %148 : vector<32xf32> to vector<32x1xf32>
    %150 = vector.broadcast %149 : vector<32x1xf32> to vector<32x8xf32>
    %151 = arith.subf %147, %150 : vector<32x8xf32>
    %152 = math.exp %151 : vector<32x8xf32>
    %cst_62 = arith.constant dense<0.000000e+00> : vector<32xf32>
    %153 = vector.multi_reduction <add>, %152, %cst_62 [1] : vector<32x8xf32> to vector<32xf32>
    %154 = vector.shape_cast %153 : vector<32xf32> to vector<32x1xf32>
    %155 = vector.broadcast %154 : vector<32x1xf32> to vector<32x8xf32>
    %156 = arith.divf %152, %155 : vector<32x8xf32>
    %cst_63 = arith.constant 0.000000e+00 : f32
    %157 = vector.broadcast %cst_63 : f32 to vector<8x32xf32>
    %158 = vector.extract_strided_slice %156 {offsets = [0, 0], sizes = [8, 8], strides = [1, 1]} : vector<32x8xf32> to vector<8x8xf32>
    %159 = vector.extract_strided_slice %14 {offsets = [0, 0], sizes = [1, 32], strides = [1, 1]} : vector<32x32xf32> to vector<1x32xf32>
    %160 = vector.broadcast %159 : vector<1x32xf32> to vector<8x32xf32>
    %161 = arith.mulf %144, %160 : vector<8x32xf32>
    %cst_64 = arith.constant dense<0.000000e+00> : vector<8x32xf32>
    %162 = tpu.matmul %158, %161, %cst_64 {dimension_numbers = #tpu.dot_dimension_numbers<[1], [0], [0], [1], [0, 0, 1, 1], [], []>} : vector<8x8xf32>, vector<8x32xf32>, vector<8x32xf32> -> vector<8x32xf32>
    %163 = arith.addf %157, %162 : vector<8x32xf32>
    %164 = vector.extract_strided_slice %156 {offsets = [8, 0], sizes = [8, 8], strides = [1, 1]} : vector<32x8xf32> to vector<8x8xf32>
    %165 = vector.extract_strided_slice %14 {offsets = [8, 0], sizes = [1, 32], strides = [1, 1]} : vector<32x32xf32> to vector<1x32xf32>
    %166 = vector.broadcast %165 : vector<1x32xf32> to vector<8x32xf32>
    %167 = arith.mulf %144, %166 : vector<8x32xf32>
    %cst_65 = arith.constant dense<0.000000e+00> : vector<8x32xf32>
    %168 = tpu.matmul %164, %167, %cst_65 {dimension_numbers = #tpu.dot_dimension_numbers<[1], [0], [0], [1], [0, 0, 1, 1], [], []>} : vector<8x8xf32>, vector<8x32xf32>, vector<8x32xf32> -> vector<8x32xf32>
    %169 = arith.addf %163, %168 : vector<8x32xf32>
    %170 = vector.extract_strided_slice %156 {offsets = [16, 0], sizes = [8, 8], strides = [1, 1]} : vector<32x8xf32> to vector<8x8xf32>
    %171 = vector.extract_strided_slice %14 {offsets = [16, 0], sizes = [1, 32], strides = [1, 1]} : vector<32x32xf32> to vector<1x32xf32>
    %172 = vector.broadcast %171 : vector<1x32xf32> to vector<8x32xf32>
    %173 = arith.mulf %144, %172 : vector<8x32xf32>
    %cst_66 = arith.constant dense<0.000000e+00> : vector<8x32xf32>
    %174 = tpu.matmul %170, %173, %cst_66 {dimension_numbers = #tpu.dot_dimension_numbers<[1], [0], [0], [1], [0, 0, 1, 1], [], []>} : vector<8x8xf32>, vector<8x32xf32>, vector<8x32xf32> -> vector<8x32xf32>
    %175 = arith.addf %169, %174 : vector<8x32xf32>
    %176 = vector.extract_strided_slice %156 {offsets = [24, 0], sizes = [8, 8], strides = [1, 1]} : vector<32x8xf32> to vector<8x8xf32>
    %177 = vector.extract_strided_slice %14 {offsets = [24, 0], sizes = [1, 32], strides = [1, 1]} : vector<32x32xf32> to vector<1x32xf32>
    %178 = vector.broadcast %177 : vector<1x32xf32> to vector<8x32xf32>
    %179 = arith.mulf %144, %178 : vector<8x32xf32>
    %cst_67 = arith.constant dense<0.000000e+00> : vector<8x32xf32>
    %180 = tpu.matmul %176, %179, %cst_67 {dimension_numbers = #tpu.dot_dimension_numbers<[1], [0], [0], [1], [0, 0, 1, 1], [], []>} : vector<8x8xf32>, vector<8x32xf32>, vector<8x32xf32> -> vector<8x32xf32>
    %181 = arith.addf %175, %180 : vector<8x32xf32>
    %c472 = arith.constant 472 : index
    %c0_68 = arith.constant 0 : index
    %182 = vector.load %arg2[%c472, %c0_68] : memref<744x128xf32, #tpu.memory_space<vmem>>, vector<32x32xf32>
    %cst_69 = arith.constant dense<0.000000e+00> : vector<8x32xf32>
    %183 = tpu.matmul %181, %182, %cst_69 {dimension_numbers = #tpu.dot_dimension_numbers<[1], [0], [0], [1], [0, 0, 1, 1], [], []>} : vector<8x32xf32>, vector<32x32xf32>, vector<8x32xf32> -> vector<8x32xf32>
    %c504 = arith.constant 504 : index
    %c0_70 = arith.constant 0 : index
    %184 = vector.load %arg2[%c504, %c0_70] : memref<744x128xf32, #tpu.memory_space<vmem>>, vector<1x32xf32>
    %185 = vector.broadcast %184 : vector<1x32xf32> to vector<8x32xf32>
    %186 = arith.addf %183, %185 : vector<8x32xf32>
    %187 = arith.addf %129, %186 : vector<8x32xf32>
    %c512 = arith.constant 512 : index
    %c0_71 = arith.constant 0 : index
    %188 = vector.load %arg2[%c512, %c0_71] : memref<744x128xf32, #tpu.memory_space<vmem>>, vector<1x32xf32>
    %c520 = arith.constant 520 : index
    %c0_72 = arith.constant 0 : index
    %189 = vector.load %arg2[%c520, %c0_72] : memref<744x128xf32, #tpu.memory_space<vmem>>, vector<1x32xf32>
    %cst_73 = arith.constant dense<0.000000e+00> : vector<8xf32>
    %190 = vector.multi_reduction <add>, %187, %cst_73 [1] : vector<8x32xf32> to vector<8xf32>
    %191 = vector.shape_cast %190 : vector<8xf32> to vector<8x1xf32>
    %cst_74 = arith.constant 3.200000e+01 : f32
    %192 = vector.broadcast %cst_74 : f32 to vector<8x1xf32>
    %193 = arith.divf %191, %192 : vector<8x1xf32>
    %194 = vector.broadcast %193 : vector<8x1xf32> to vector<8x32xf32>
    %195 = arith.subf %187, %194 : vector<8x32xf32>
    %196 = arith.mulf %195, %195 : vector<8x32xf32>
    %cst_75 = arith.constant dense<0.000000e+00> : vector<8xf32>
    %197 = vector.multi_reduction <add>, %196, %cst_75 [1] : vector<8x32xf32> to vector<8xf32>
    %198 = vector.shape_cast %197 : vector<8xf32> to vector<8x1xf32>
    %cst_76 = arith.constant 3.200000e+01 : f32
    %199 = vector.broadcast %cst_76 : f32 to vector<8x1xf32>
    %200 = arith.divf %198, %199 : vector<8x1xf32>
    %cst_77 = arith.constant 9.99999974E-6 : f32
    %201 = vector.broadcast %cst_77 : f32 to vector<8x1xf32>
    %202 = arith.addf %200, %201 : vector<8x1xf32>
    %203 = math.rsqrt %202 : vector<8x1xf32>
    %204 = vector.broadcast %203 : vector<8x1xf32> to vector<8x32xf32>
    %205 = arith.mulf %195, %204 : vector<8x32xf32>
    %206 = vector.broadcast %188 : vector<1x32xf32> to vector<8x32xf32>
    %207 = arith.mulf %205, %206 : vector<8x32xf32>
    %208 = vector.broadcast %189 : vector<1x32xf32> to vector<8x32xf32>
    %209 = arith.addf %207, %208 : vector<8x32xf32>
    %c528 = arith.constant 528 : index
    %c0_78 = arith.constant 0 : index
    %210 = vector.load %arg2[%c528, %c0_78] : memref<744x128xf32, #tpu.memory_space<vmem>>, vector<32x64xf32>
    %cst_79 = arith.constant dense<0.000000e+00> : vector<8x64xf32>
    %211 = tpu.matmul %209, %210, %cst_79 {dimension_numbers = #tpu.dot_dimension_numbers<[1], [0], [0], [1], [0, 0, 1, 1], [], []>} : vector<8x32xf32>, vector<32x64xf32>, vector<8x64xf32> -> vector<8x64xf32>
    %c560 = arith.constant 560 : index
    %c0_80 = arith.constant 0 : index
    %212 = vector.load %arg2[%c560, %c0_80] : memref<744x128xf32, #tpu.memory_space<vmem>>, vector<1x64xf32>
    %213 = vector.broadcast %212 : vector<1x64xf32> to vector<8x64xf32>
    %214 = arith.addf %211, %213 : vector<8x64xf32>
    %cst_81 = arith.constant 0.000000e+00 : f32
    %215 = vector.broadcast %cst_81 : f32 to vector<8x64xf32>
    %216 = arith.maximumf %214, %215 : vector<8x64xf32>
    %c568 = arith.constant 568 : index
    %c0_82 = arith.constant 0 : index
    %217 = vector.load %arg2[%c568, %c0_82] : memref<744x128xf32, #tpu.memory_space<vmem>>, vector<64x32xf32>
    %cst_83 = arith.constant dense<0.000000e+00> : vector<8x32xf32>
    %218 = tpu.matmul %216, %217, %cst_83 {dimension_numbers = #tpu.dot_dimension_numbers<[1], [0], [0], [1], [0, 0, 1, 1], [], []>} : vector<8x64xf32>, vector<64x32xf32>, vector<8x32xf32> -> vector<8x32xf32>
    %c632 = arith.constant 632 : index
    %c0_84 = arith.constant 0 : index
    %219 = vector.load %arg2[%c632, %c0_84] : memref<744x128xf32, #tpu.memory_space<vmem>>, vector<1x32xf32>
    %220 = vector.broadcast %219 : vector<1x32xf32> to vector<8x32xf32>
    %221 = arith.addf %218, %220 : vector<8x32xf32>
    %222 = arith.addf %209, %221 : vector<8x32xf32>
    %c640 = arith.constant 640 : index
    %c0_85 = arith.constant 0 : index
    %223 = vector.load %arg2[%c640, %c0_85] : memref<744x128xf32, #tpu.memory_space<vmem>>, vector<1x32xf32>
    %c648 = arith.constant 648 : index
    %c0_86 = arith.constant 0 : index
    %224 = vector.load %arg2[%c648, %c0_86] : memref<744x128xf32, #tpu.memory_space<vmem>>, vector<1x32xf32>
    %cst_87 = arith.constant dense<0.000000e+00> : vector<8xf32>
    %225 = vector.multi_reduction <add>, %222, %cst_87 [1] : vector<8x32xf32> to vector<8xf32>
    %226 = vector.shape_cast %225 : vector<8xf32> to vector<8x1xf32>
    %cst_88 = arith.constant 3.200000e+01 : f32
    %227 = vector.broadcast %cst_88 : f32 to vector<8x1xf32>
    %228 = arith.divf %226, %227 : vector<8x1xf32>
    %229 = vector.broadcast %228 : vector<8x1xf32> to vector<8x32xf32>
    %230 = arith.subf %222, %229 : vector<8x32xf32>
    %231 = arith.mulf %230, %230 : vector<8x32xf32>
    %cst_89 = arith.constant dense<0.000000e+00> : vector<8xf32>
    %232 = vector.multi_reduction <add>, %231, %cst_89 [1] : vector<8x32xf32> to vector<8xf32>
    %233 = vector.shape_cast %232 : vector<8xf32> to vector<8x1xf32>
    %cst_90 = arith.constant 3.200000e+01 : f32
    %234 = vector.broadcast %cst_90 : f32 to vector<8x1xf32>
    %235 = arith.divf %233, %234 : vector<8x1xf32>
    %cst_91 = arith.constant 9.99999974E-6 : f32
    %236 = vector.broadcast %cst_91 : f32 to vector<8x1xf32>
    %237 = arith.addf %235, %236 : vector<8x1xf32>
    %238 = math.rsqrt %237 : vector<8x1xf32>
    %239 = vector.broadcast %238 : vector<8x1xf32> to vector<8x32xf32>
    %240 = arith.mulf %230, %239 : vector<8x32xf32>
    %241 = vector.broadcast %223 : vector<1x32xf32> to vector<8x32xf32>
    %242 = arith.mulf %240, %241 : vector<8x32xf32>
    %243 = vector.broadcast %224 : vector<1x32xf32> to vector<8x32xf32>
    %244 = arith.addf %242, %243 : vector<8x32xf32>
    %c656 = arith.constant 656 : index
    %c0_92 = arith.constant 0 : index
    %245 = vector.load %arg2[%c656, %c0_92] : memref<744x128xf32, #tpu.memory_space<vmem>>, vector<32x16xf32>
    %cst_93 = arith.constant dense<0.000000e+00> : vector<8x16xf32>
    %246 = tpu.matmul %244, %245, %cst_93 {dimension_numbers = #tpu.dot_dimension_numbers<[1], [0], [0], [1], [0, 0, 1, 1], [], []>} : vector<8x32xf32>, vector<32x16xf32>, vector<8x16xf32> -> vector<8x16xf32>
    %c688 = arith.constant 688 : index
    %c0_94 = arith.constant 0 : index
    %247 = vector.load %arg2[%c688, %c0_94] : memref<744x128xf32, #tpu.memory_space<vmem>>, vector<1x16xf32>
    %248 = vector.broadcast %247 : vector<1x16xf32> to vector<8x16xf32>
    %249 = arith.addf %246, %248 : vector<8x16xf32>
    %cst_95 = arith.constant 0.000000e+00 : f32
    %250 = vector.broadcast %cst_95 : f32 to vector<8x16xf32>
    %251 = arith.maximumf %249, %250 : vector<8x16xf32>
    %c696 = arith.constant 696 : index
    %c0_96 = arith.constant 0 : index
    %252 = vector.load %arg2[%c696, %c0_96] : memref<744x128xf32, #tpu.memory_space<vmem>>, vector<1x16xf32>
    %cst_97 = arith.constant dense<0.000000e+00> : vector<1x8xf32>
    %253 = tpu.matmul %252, %251, %cst_97 {dimension_numbers = #tpu.dot_dimension_numbers<[1], [1], [0], [0], [0, 0, 1, 0], [], []>} : vector<1x16xf32>, vector<8x16xf32>, vector<1x8xf32> -> vector<1x8xf32>
    %c704 = arith.constant 704 : index
    %c0_98 = arith.constant 0 : index
    %254 = vector.load %arg2[%c704, %c0_98] : memref<744x128xf32, #tpu.memory_space<vmem>>, vector<1x1xf32>
    %255 = vector.broadcast %254 : vector<1x1xf32> to vector<1x8xf32>
    %256 = arith.addf %253, %255 : vector<1x8xf32>
    %cst_99 = arith.constant 0.000000e+00 : f32
    %257 = vector.broadcast %cst_99 : f32 to vector<1x8xf32>
    %258 = arith.subf %257, %256 : vector<1x8xf32>
    %259 = math.exp %258 : vector<1x8xf32>
    %cst_100 = arith.constant 1.000000e+00 : f32
    %260 = vector.broadcast %cst_100 : f32 to vector<1x8xf32>
    %261 = arith.addf %260, %259 : vector<1x8xf32>
    %cst_101 = arith.constant 1.000000e+00 : f32
    %262 = vector.broadcast %cst_101 : f32 to vector<1x8xf32>
    %263 = arith.divf %262, %261 : vector<1x8xf32>
    %264 = vector.shape_cast %263 : vector<1x8xf32> to vector<1x1x8xf32>
    %c0_102 = arith.constant 0 : index
    %c0_103 = arith.constant 0 : index
    %c0_104 = arith.constant 0 : index
    %265 = vector.load %arg3[%c0_102, %c0_103, %c0_104] : memref<1x1x8xf32, #tpu.memory_space<vmem>>, vector<1x1x8xf32>
    tpu.vector_store %arg3[%c0_102, %c0_103, %c0_104], %264 {strides = array<i32>} : memref<1x1x8xf32, #tpu.memory_space<vmem>>, vector<1x1x8xf32>,
    return
  }
  func.func @transform_0(%arg0: i32) -> (i32, i32, i32) {
    %c0_i32 = arith.constant 0 : i32
    %c0_i32_0 = arith.constant 0 : i32
    %c0_i32_1 = arith.constant 0 : i32
    return %arg0, %c0_i32, %c0_i32_0 : i32, i32, i32
  }
  func.func @transform_1(%arg0: i32) -> (i32, i32) {
    %c0_i32 = arith.constant 0 : i32
    %c0_i32_0 = arith.constant 0 : i32
    %c0_i32_1 = arith.constant 0 : i32
    return %c0_i32, %c0_i32_0 : i32, i32
  }
  func.func @transform_2(%arg0: i32) -> (i32, i32, i32) {
    %c0_i32 = arith.constant 0 : i32
    %c0_i32_0 = arith.constant 0 : i32
    %c0_i32_1 = arith.constant 0 : i32
    return %arg0, %c0_i32, %c0_i32_0 : i32, i32, i32
  }
}

</mosaic_0001>

<bundles_post_ra>
// kernel: policy_forward.1
= control target key start
LH: loop header
LB: loop body
LE: loop exit
PB: predicated region body
PF: predicated region fallthrough
CT: control target
= control target key end

     0   :  { %7 = vsyncpa [#allocation3], 0  ;;  %s3660_s0 = inlined_call_operand.vmem [shape: f32[2,8,16], index: 0, kind: input, shape index: {}]   ;;  %s3661_s1 = inlined_call_operand.hbm [shape: f32[744,128], index: 1, kind: input, shape index: {}]   ;;  %s3662_s2 = inlined_call_operand.hbm [shape: f32[2,1,8], index: 2, kind: output, shape index: {}]  }
   0x1   :  { %8 = vsyncpa [#allocation4], 0 }
   0x2   :  { %10 = vsyncpa [#allocation4 + $0x1], 0  ;;  %s3309_s9 = smov 0   ;;  %s3311_s10 = smov 0  }
   0x3   :  { %s3313_s11 = smov 0   ;;  %s3315_s12 = smov 0  }
   0x4 LB: > { %s3330_s13 = sadd.s32 4294967295, %s3284_s12   ;;  %s2572_s14 = sadd.s32 4294967294, %s3284_s12   ;;  %s3284_s12 = sphi %s3315_s12, %s3678_s12   ;;  %s3280_s11 = sphi %s3313_s11, %s3677_s11   ;;  %s3276_s10 = sphi %s3311_s10, %s3676_s10   ;;  %s3272_s9 = sphi %s3309_s9, %s3675_s9  }
   0x5   : > { %s3334_s15 = sadd.s32 1, %s3284_s12   ;;  %s70_s16 = sadd.s32 1, %s3280_s11 }
   0x6   : > { %s67_s17 = ssub.s32 %s3284_s12, %s3334_s15  ;;  %p80_p0 = scmp.ne.s32.totalorder %s3280_s11, %s3276_s10 }
   0x7   : > { %p68_p1 = scmp.eq.s32.totalorder %s67_s17, 0  ;;  %p81_p2 = scmp.eq.s32.totalorder %s3330_s13, 1 }
   0x8   : > { %p86_p3 = scmp.ne.s32.totalorder %s3276_s10, %s3272_s9  ;;  %p87_p4 = scmp.eq.s32.totalorder %s2572_s14, 1 }
   0x9   : > { %s3345_s18 = scalar_select %p68_p1, %s3280_s11, %s70_s16  }
   0xa   : > { %p3347_p5 = por %p81_p2, %p80_p0  ;;  %p3351_p6 = por %p87_p4, %p86_p3 }
   0xb   : > { %p2573_p7 = scmp.ge.s32.totalorder %s3284_s12, 1  ;;  %p94_p8 = scmp.lt.s32.totalorder %s3284_s12, 3 }
   0xc   : > { %s3666_s19 = scalar_select %p3347_p5, 1, 0 }
   0xd   : > { %s3667_s20 = scalar_select %p3351_p6, 1, 0 }
   0xe   : > { %p3663_p9 = scmp.eq.s32.totalorder %s3330_s13, 0  ;;  %p3358_p10 = pnand %p2573_p7, %p94_p8 }
   0xf   : > { %s3286_s22 = smov [#allocation2]   ;;  %s3190_s27 = scalar_lea.hbm %s3661_s1, 11904 }
  0x10   : > { %s3668_s21 = scalar_select %p3358_p10, 1, 0 }
  0x11   : > { %s106_s23 = sshll.u32 %s3286_s22, 4  ;;  %p3095_p11 = pneg %p3358_p10  ;;  %s107_s23 = int_to_ptr.vmem [resolvable:$true] %s106_s23 }
  0x12   : > { %p3191_p13 = scmp.ne.s32.totalorder %s3661_s1, %s3190_s27  ;;  %p3197_p3 = scmp.lt.u32.totalorder %s3190_s27, %s3661_s1 }
  0x13   : > { %p3366_p12 = pnand %p3663_p9, %p3095_p11 }
  0x15   : > { %p3192_p0 = pneg %p3366_p12 }
  0x17   : > { %p3193_p1 = pnand %p3192_p0, %p3191_p13 }
  0x19   : > { %p3194_p2 = pneg %p3193_p1 }
  0x1b   : > { %p3199_p4 = pnand %p3197_p3, %p3194_p2 }
  0x1d   : > { %3202 = shalt.err (!%p3199_p4)
}
  0x1e   : > { %s3203_s4 = scalar_lea.vmem %s107_s23, 11904  ;;  %p3211_p9 = scmp.lt.s32.totalorder %s107_s23, %s107_s23 }
  0x1f   : > { %p3204_p7 = scmp.ne.s32.totalorder %s107_s23, %s3203_s4  ;;  %p3212_p6 = scmp.lt.s32.totalorder %s3203_s4, %s3203_s4 }
  0x21   : > { %p3206_p8 = pnand %p3204_p7, %p3192_p0  ;;  %p3213_p5 = por %p3212_p6, %p3211_p9 }
  0x23   : > { %p3207_p11 = pneg %p3206_p8 }
  0x25   : > { %p3214_p10 = pnand %p3213_p5, %p3207_p11 }
  0x27   : > { %3217 = shalt.err (!%p3214_p10)
}
  0x28   : > { %s3287_s5 = smov 128   ;;  %s3288_s6 = smov 8  }
  0x29   : > { %3098 = dma.hbm_to_vmem [thread:$0]  (!%p3366_p12), %s3661_s1, 11904, %s107_s23, [#allocation3], %s3287_s5, %s3287_s5, %s3288_s6  }
  0x2a   : > { %p3670_p13 = scmp.ne.s32.totalorder %s3668_s21, 0 }
  0x2b   : > { %p3671_p1 = scmp.eq.s32.totalorder (!%p3670_p13), %s3330_s13, 0 }
  0x2c   : > { %129 = sbr.rel (%p3670_p13) target bundleno = 5480 (0x1568), region = 28 }
  0x33   : > { %3263 = dma.done.wait (%p3671_p1), [#allocation3], 11904   ;;  %p3672_p0 = pmov %p3671_p1 }
  0x34   : > { %p149_p5 = scmp.lt.s32.totalorder %s3330_s13, 1  ;;  %v3289_v0 = vmov 0.0|0.0   ;;  %vm3290_vm0 = vmmov 0   ;;  %v3291_v1 = vmov 0.0   ;;  %v154_v2 = vld [vmem:[#allocation2] sm:$0xff]  ;;  %v155_v3 = vld [vmem:[#allocation2 + $0x8] sm:$0xff]  ;;  %v710_v36 = vlaneseq }
  0x35   : > { %3265 = vsyncadd (%p3672_p0), [#allocation3], 4294955392  ;;  %2981 = vmatprep.subr.bf16.mxu0 %v3289_v0  ;;  %2751 = vmatprep.mubr.msk.f32.mxu0 %vm3290_vm0, %v3291_v1  ;;  %v2982_v4 = vpack.c.bf16 %v155_v3, %v154_v2  ;;  %vm161_vm1 = vcmask 130048   ;;  %v236_v6 = vld [vmem:[#allocation2 + $0x18] sm:$0xff]  ;;  %v237_v7 = vld [vmem:[#allocation2 + $0x20] sm:$0xff]  ;;  %vm329_vm2 = vcmask 261120  }
  0x36   : > { %s150_s14 = scalar_select %p149_p5, %s3330_s13, 1  ;;  %2984 = vmatprep.subr.bf16.mxu1 %v3289_v0  ;;  %2758 = vmatprep.mubr.msk.f32.mxu1 %vm3290_vm0, %v3291_v1  ;;  %v2985_v8 = vpack.c.bf16 %v237_v7, %v236_v6  ;;  %v320_v9 = vld [vmem:[#allocation2 + $0x30] sm:$0xff]  ;;  %v321_v10 = vld [vmem:[#allocation2 + $0x38] sm:$0xff]  ;;  %v322_v12 = vld [vmem:[#allocation2 + $0x40] sm:$0xff]  ;;  %v711_v39 = vshrl.u32 %v710_v36, 7  ;;  %vm665_vm3 = vcmask 64512  }
  0x37   : > { %2983 = vmatpush3.bf16.msra.mxu0 %v2982_v4  ;;  %v2988_v11 = vpack.c.bf16 %v321_v10, %v320_v9  ;;  %v323_v13 = vld [vmem:[#allocation2 + $0x48] sm:$0xff]  ;;  %v2579_v15 = vld [vmem:[#allocation2 + $0x10] ss:$0 sm:$0xff]  ;;  %v403_v16 = vld [vmem:[#allocation2 + $0x58] sm:$0xff]  ;;  %vm1229_vm4 = vcmask 523264   ;;  %s147_s23 = sand.u32 1, %s3276_s10  }
  0x38   : > { %s2578_s16 = sshll.u32 %s150_s14, 3  ;;  %2987 = vmatprep.subr.bf16.mxu0 %v3289_v0  ;;  %2986 = vmatpush3.bf16.msra.mxu1 %v2985_v8  ;;  %v2991_v14 = vpack.c.bf16 %v323_v13, %v322_v12  ;;  %v404_v17 = vld [vmem:[#allocation2 + $0x60] sm:$0xff]  ;;  %v405_v23 = vld [vmem:[#allocation2 + $0x68] sm:$0xff]  ;;  %v406_v24 = vld [vmem:[#allocation2 + $0x70] sm:$0xff]  ;;  %v3436_v50 = vsub.s32 0, %v711_v39  ;;  %s2637_s24 = sshll.u32 %s3330_s13, 4 }
  0x39   : > { %s152_s22 = scalar_lea.vmem %s3660_s0, %s2578_s16  ;;  %2993 = vmatprep.subr.bf16.mxu1 %v3289_v0  ;;  %v2994_v21 = vpack.c.bf16 %v404_v17, %v403_v16  ;;  %v2997_v25 = vpack.c.bf16 %v406_v24, %v405_v23  ;;  %v482_v26 = vld [vmem:[#allocation2 + $0x80] sm:$0xff]  ;;  %v483_v27 = vld [vmem:[#allocation2 + $0x88] sm:$0xff]  ;;  %v484_v33 = vld [vmem:[#allocation2 + $0x90] sm:$0xff]  ;;  %s148_s25 = scalar_lea.vmem [#allocation5], %s147_s23  ;;  %vm2490_vm5 = vcmask 57344  }
  0x3a   : > { %v153_v5 = vld [vmem:[%s152_s22] sm:$0xff]  ;;  %v2581_v28 = vld [vmem:[#allocation2 + $0x28] ss:$0 sm:$0xff]  ;;  %v3000_v30 = vpack.c.bf16 %v483_v27, %v482_v26  ;;  %v485_v34 = vld [vmem:[#allocation2 + $0x98] sm:$0xff]  ;;  %s2505_s26 = sshll.u32 %s148_s25, 4  ;;  %s3618_s29 = scalar_lea.hbm %s3662_s2, %s2637_s24  ;;  %s3620_s26 = int_to_ptr.vmem [resolvable:$true] %s2505_s26 }
  0x3b   : > { %2752 = vmatmul.mubr.msk.f32.vlgmr.msra.gmra.mrb[0].mxu0 %vm161_vm1, %v153_v5  ;;  %v3003_v35 = vpack.c.bf16 %v485_v34, %v484_v33  ;;  %v2583_v37 = vld [vmem:[#allocation2 + $0x50] ss:$0 sm:$0xff]  ;;  %v2585_v38 = vld [vmem:[#allocation2 + $0x78] ss:$0 sm:$0xff]  ;;  %v3428_v42 = vld [vmem:[#allocation2 + $0x2c8] sm:$0xff]  ;;  %s2493_s30 = scalar_lea.sflag [#allocation4], %s147_s23 }
  0x3c   : > { %2769 = vmatprep.mubr.msk.f32.mxu0 %vm3290_vm0, %v3291_v1  ;;  %2989 = vmatpush3.bf16.msra.mxu0 %v2988_v11  ;;  %v3430_v47 = vld [vmem:[#allocation2 + $0x2d0] sm:$0xff]  ;;  %v3434_v49 = vld [vmem:[#allocation2 + $0x2d8] sm:$0xff]  ;;  %v2587_v52 = vld [vmem:[#allocation2 + $0xa0] ss:$0 sm:$0xff]  ;;  %v3472_v36 = vrot.slane %v3428_v42, %v3436_v50  ;;  %s3218_s3 = scalar_lea.vmem %s3620_s26, 16  ;;  %p3673_p9 = scmp.ne.s32.totalorder %s3666_s19, 0 }
  0x3d   : > { %2990 = vmatprep.subr.bf16.mxu0 %v3289_v0  ;;  %v3443_v54 = vld [vmem:[#allocation2 + $0x2e0] sm:$0xff]  ;;  %v3448_v55 = vrot.slane %v3430_v47, %v3436_v50  ;;  %v1024_v27 = vld [vmem:[#allocation2 + $0xa8] sm:$0xff]  ;;  %p3219_p6 = scmp.ne.s32.totalorder %s3620_s26, %s3218_s3  ;;  %s3293_s13 = smov [#allocation5]  }
  0x3e   : > { %s3222_s4 = sshll.u32 %s3293_s13, 4  ;;  %s3223_s4 = int_to_ptr.vmem [resolvable:$false] %s3222_s4 }
  0x3f   : > { %p3220_p10 = pnand %p3219_p6, %p3673_p9  ;;  %s3224_s5 = scalar_lea.vmem %s3223_s4, 32 }
  0x40   : > { %2992 = vmatpush3.bf16.msra.mxu0 %v2991_v14  ;;  %p3225_p2 = scmp.lt.s32.totalorder %s3620_s26, %s3223_s4  ;;  %p3226_p3 = scmp.lt.s32.totalorder %s3224_s5, %s3218_s3 }
  0x41   : > { %2999 = vmatprep.subr.bf16.mxu0 %v3289_v0  ;;  %p3221_p12 = pneg %p3220_p10 }
  0x42   : > { %p3227_p4 = por %p3226_p3, %p3225_p2 }
  0x44   : > { %p3228_p7 = pnand %p3227_p4, %p3221_p12 }
 0x10e   : > { %v231_v18 = vpop.f32.mrb[0].mxu0 }
 0x10f   : > { %v232_v19 = vadd.f32 %v2579_v15, %v231_v18  ;;  %v2753_v20 = vpop.f32.mrb[1].mxu0 }
 0x111   : > { %v235_v22 = vmax.f32 %v232_v19, 0.0 }
 0x113   : > { %2759 = vmatmul.mubr.msk.f32.vlgmr.msra.gmra.mrb[0].mxu1 %vm161_vm1, %v235_v22 }
 0x114   : > { %2995 = vmatpush3.bf16.msra.mxu1 %v2994_v21  ;;  %2780 = vmatprep.mubr.msk.f32.mxu1 %vm3290_vm0, %v3291_v1 }
 0x115   : > { %2996 = vmatprep.subr.bf16.mxu1 %v3289_v0 }
 0x118   : > { %2998 = vmatpush3.bf16.msra.mxu1 %v2997_v25 }
 0x1e6   : > { %v312_v29 = vpop.f32.mrb[0].mxu1 }
 0x1e7   : > { %v3414_v31 = vadd.f32 %v2581_v28, %v312_v29  ;;  %v2760_v32 = vpop.f32.mrb[1].mxu1  ;;  %v1025_v28 = vld [vmem:[#allocation2 + $0xb0] sm:$0xff]  ;;  %v1026_v29 = vld [vmem:[#allocation2 + $0xb8] sm:$0xff] }
 0x1e8   : > { %v1027_v32 = vld [vmem:[#allocation2 + $0xc0] sm:$0xff] }
 0x1e9   : > { %2770 = vmatmul.mubr.msk.f32.vlgmr.msra.gmra.mrb[2].mxu0 %vm329_vm2, %v3414_v31  ;;  %2781 = vmatmul.mubr.msk.f32.vlgmr.msra.gmra.mrb[2].mxu1 %vm329_vm2, %v3414_v31  ;;  %v3009_v33 = vpack.c.bf16 %v1027_v32, %v1026_v29  ;;  %v1221_v29 = vld [vmem:[#allocation2 + $0x130] sm:$0xff]  ;;  %v1222_v32 = vld [vmem:[#allocation2 + $0x138] sm:$0xff] }
 0x1ea   : > { %3001 = vmatpush3.bf16.msra.mxu0 %v3000_v30  ;;  %2791 = vmatprep.mubr.msk.f32.mxu0 %vm3290_vm0, %v3291_v1  ;;  %v3006_v30 = vpack.c.bf16 %v1025_v28, %v1024_v27  ;;  %v1220_v28 = vld [vmem:[#allocation2 + $0x128] sm:$0xff] }
 0x1eb   : > { %3002 = vmatprep.subr.bf16.mxu0 %v3289_v0 }
 0x1ee   : > { %3004 = vmatpush3.bf16.msra.mxu0 %v3003_v35 }
 0x1ef   : > { %2802 = vmatprep.subr.mxu0 %v3291_v1 }
 0x1f1   : > { %2792 = vmatmul.mubr.msk.f32.vlgmr.msra.gmra.mrb[4].mxu0 %vm329_vm2, %v3414_v31 }
 0x1f2   : > { %2804 = vmatprep.mubr.msk.f32.mxu0 %vm3290_vm0, %v3291_v1 }
 0x2bc   : > { %v399_v40 = vpop.f32.mrb[2].mxu0  ;;  %v478_v41 = vpop.f32.mrb[2].mxu1 }
 0x2bd   : > { %v400_v43 = vadd.f32 %v2583_v37, %v399_v40  ;;  %v479_v44 = vadd.f32 %v2585_v38, %v478_v41  ;;  %v2771_v45 = vpop.f32.mrb[3].mxu0  ;;  %v2782_v46 = vpop.f32.mrb[3].mxu1 }
 0x2bf   : > { %2794 = vmatprep.subr.msk.mxu1 %vm329_vm2, %v479_v44  ;;  %v561_v48 = vmul.f32 %v400_v43, %v3428_v42  ;;  %v562_v51 = vmul.f32 %v400_v43, %v3430_v47  ;;  %v563_v53 = vmul.f32 %v400_v43, %v3434_v49  ;;  %v564_v59 = vmul.f32 %v400_v43, %v3443_v54 }
 0x2c0   : > { %2795 = vmatpush3.xpose.msk.msra.mxu1 %vm329_vm2, %v479_v44  ;;  %v3482_v43 = vrot.slane %v3434_v49, %v3436_v50 }
 0x2c1   : > { %2796 = vmatprep.mubr.msk.f32.mxu1 %vm329_vm2, %v561_v48  ;;  %3005 = vmatprep.subr.bf16.mxu1 %v3289_v0 }
 0x2c3   : > { %2797 = vmatmul.mubr.msk.f32.vlgmr.msra.gmra.mrb[4].mxu1 %vm329_vm2, %v562_v51  ;;  %v3492_v51 = vrot.slane %v3443_v54, %v3436_v50 }
 0x2c4   : > { %v557_v56 = vpop.f32.mrb[4].mxu0  ;;  %2799 = vmatprep.mubr.msk.f32.mxu1 %vm329_vm2, %v563_v53  ;;  %3007 = vmatpush3.bf16.msra.mxu1 %v3006_v30  ;;  %v3024_v30 = vpack.c.bf16 %v1221_v29, %v1220_v28 }
 0x2c5   : > { %v3451_v57 = vadd.f32 %v2587_v52, %v557_v56  ;;  %v2793_v58 = vpop.f32.mrb[5].mxu0  ;;  %3008 = vmatprep.subr.bf16.mxu1 %v3289_v0 }
 0x2c7   : > { %2800 = vmatmul.mubr.msk.f32.gmra.mrb[6].mxu1 %vm329_vm2, %v564_v59  ;;  %v719_v60 = vmul.f32 %v3448_v55, %v3451_v57  ;;  %v714_v40 = vmul.f32 %v3472_v36, %v3451_v57  ;;  %v870_v46 = vmul.f32 %v3482_v43, %v3451_v57  ;;  %v949_v53 = vmul.f32 %v3492_v51, %v3451_v57  ;;  %v2598_v57 = vld [vmem:[#allocation2 + $0xc8] ss:$0 sm:$0xff] }
 0x2c8   : > { %2830 = vmatprep.mubr.msk.f32.mxu1 %vm3290_vm0, %v3291_v1  ;;  %3010 = vmatpush3.bf16.msra.mxu1 %v3009_v33  ;;  %v1223_v33 = vld [vmem:[#allocation2 + $0x140] sm:$0xff] }
 0x2c9   : > { %2803 = vmatpush3.msra.mxu0 %v719_v60  ;;  %3011 = vmatprep.subr.bf16.mxu1 %v3289_v0 }
 0x2ca   : > { %2807 = vmatprep.subr.mxu0 %v3291_v1 }
 0x396   : > { %v2798_v61 = vpop.f32.mrb[4].mxu1 }
 0x397   : > { %v646_v62 = vpop.f32.mrb[5].mxu1  ;;  %v669_v63 = vsel %vm665_vm3, %v2798_v61, -inf }
 0x398   : > { %670 = vmax.xlane.f32.xlu0 %v669_v63  ;;  %v666_v4 = vsel %vm665_vm3, %v646_v62, -inf }
 0x39a   : > { %v2801_v2 = vpop.f32.mrb[6].mxu1 }
 0x39b   : > { %v656_v3 = vpop.f32.mrb[7].mxu1  ;;  %v675_v6 = vsel %vm665_vm3, %v2801_v2, -inf }
 0x39c   : > { %667 = vmax.xlane.f32.xlu0 %v666_v4  ;;  %v672_v5 = vsel %vm665_vm3, %v656_v3, -inf }
 0x39d   : > { %673 = vmax.xlane.f32.xlu1 %v672_v5 }
 0x3a1   : > { %676 = vmax.xlane.f32.xlu1 %v675_v6 }
 0x425   : > { %v671_v7 = vpop.xlane.xlu0 %670 }
 0x426   : > { %v679_v8 = vsub.f32 %v2798_v61, %v671_v7 }
 0x428   : > { %v684_v9 = vmul.f32 1.442695, %v679_v8  ;;  %v1133_v8 = vld [vmem:[#allocation2 + $0xe0] sm:$0xff] }
 0x429   : > { %v668_v10 = vpop.xlane.xlu0 %667 }
 0x42a   : > { %3146 = vpow2.f32 %v684_v9  ;;  %v678_v11 = vsub.f32 %v646_v62, %v668_v10  ;;  %v674_v12 = vpop.xlane.xlu1 %673  ;;  %v1134_v9 = vld [vmem:[#allocation2 + $0xe8] sm:$0xff] }
 0x42b   : > { %v680_v13 = vsub.f32 %v656_v3, %v674_v12  ;;  %v3012_v10 = vpack.c.bf16 %v1134_v9, %v1133_v8  ;;  %v1136_v12 = vld [vmem:[#allocation2 + $0xf8] sm:$0xff] }
 0x42c   : > { %v682_v14 = vmul.f32 1.442695, %v678_v11  ;;  %v1135_v11 = vld [vmem:[#allocation2 + $0xf0] sm:$0xff] }
 0x42d   : > { %v686_v15 = vmul.f32 1.442695, %v680_v13  ;;  %v3015_v13 = vpack.c.bf16 %v1136_v12, %v1135_v11 }
 0x42e   : > { %3148 = vpow2.f32 %v682_v14  ;;  %v677_v16 = vpop.xlane.xlu1 %676 }
 0x42f   : > { %3150 = vpow2.f32 %v686_v15  ;;  %v681_v17 = vsub.f32 %v2801_v2, %v677_v16 }
 0x431   : > { %v688_v18 = vmul.f32 1.442695, %v681_v17  ;;  %v2600_v17 = vld [vmem:[#allocation2 + $0xd0] ss:$0 sm:$0xff] }
 0x433   : > { %3152 = vpow2.f32 %v688_v18 }
 0x434   : > { %v3147_v19 = vpop.eup %3146 }
 0x435   : > { %v693_v20 = vsel %vm665_vm3, %v3147_v19, 0.0 }
 0x436   : > { %694 = vadd.xlane.f32.xlu0 %v693_v20  ;;  %v1217_v20 = vld [vmem:[#allocation2 + $0x110] sm:$0xff] }
 0x438   : > { %v3149_v21 = vpop.eup %3148 }
 0x439   : > { %v3151_v22 = vpop.eup %3150  ;;  %v690_v23 = vsel %vm665_vm3, %v3149_v21, 0.0 }
 0x43a   : > { %691 = vadd.xlane.f32.xlu1 %v690_v23  ;;  %v696_v24 = vsel %vm665_vm3, %v3151_v22, 0.0 }
 0x43b   : > { %697 = vadd.xlane.f32.xlu0 %v696_v24 }
 0x43d   : > { %v3153_v25 = vpop.eup %3152 }
 0x43e   : > { %v699_v26 = vsel %vm665_vm3, %v3153_v25, 0.0 }
 0x43f   : > { %700 = vadd.xlane.f32.xlu1 %v699_v26  ;;  %v1219_v26 = vld [vmem:[#allocation2 + $0x120] sm:$0xff] }
 0x4c3   : > { %v695_v34 = vpop.xlane.xlu0 %694 }
 0x4c4   : > { %3154 = vrcp.f32 %v695_v34  ;;  %v3027_v34 = vpack.c.bf16 %v1223_v33, %v1222_v32 }
 0x4c7   : > { %v692_v35 = vpop.xlane.xlu1 %691 }
 0x4c8   : > { %3156 = vrcp.f32 %v692_v35  ;;  %v698_v39 = vpop.xlane.xlu0 %697  ;;  %v2602_v35 = vld [vmem:[#allocation2 + $0x100] ss:$0 sm:$0xff] }
 0x4c9   : > { %3158 = vrcp.f32 %v698_v39 }
 0x4cc   : > { %v701_v45 = vpop.xlane.xlu1 %700 }
 0x4cd   : > { %3160 = vrcp.f32 %v701_v45 }
 0x4ce   : > { %v3155_v37 = vpop.eup %3154 }
 0x4cf   : > { %v705_v38 = vmul.f32 %v3155_v37, %v3147_v19  ;;  %v1216_v19 = vld [vmem:[#allocation2 + $0x108] sm:$0xff] }
 0x4d0   : > { %v3018_v23 = vpack.c.bf16 %v1217_v20, %v1216_v19  ;;  %v1413_v20 = vld [vmem:[#allocation2 + $0x198] sm:$0xff] }
 0x4d1   : > { %2805 = vmatmul.mubr.msk.f32.vlgmr.msra.gmra.mrb[6].mxu0 %vm665_vm3, %v705_v38 }
 0x4d2   : > { %2808 = vmatpush3.msra.mxu0 %v714_v40  ;;  %2809 = vmatprep.mubr.msk.f32.mxu0 %vm3290_vm0, %v3291_v1  ;;  %v3157_v41 = vpop.eup %3156 }
 0x4d3   : > { %2812 = vmatprep.subr.mxu0 %v3291_v1  ;;  %v703_v44 = vmul.f32 %v3157_v41, %v3149_v21  ;;  %v3159_v48 = vpop.eup %3158  ;;  %v2601_v21 = vld [vmem:[#allocation2 + $0xd8] ss:$0 sm:$0xff]  ;;  %v2604_v41 = vld [vmem:[#allocation2 + $0x148] ss:$0 sm:$0xff] }
 0x4d4   : > { %v707_v52 = vmul.f32 %v3159_v48, %v3151_v22 }
 0x4d7   : > { %v3161_v56 = vpop.eup %3160 }
 0x4d8   : > { %v709_v58 = vmul.f32 %v3161_v56, %v3153_v25  ;;  %v1218_v25 = vld [vmem:[#allocation2 + $0x118] sm:$0xff] }
 0x4d9   : > { %2810 = vmatmul.mubr.msk.f32.vlgmr.msra.gmra.mrb[6].mxu0 %vm665_vm3, %v703_v44  ;;  %v3021_v27 = vpack.c.bf16 %v1219_v26, %v1218_v25 }
 0x4da   : > { %2813 = vmatpush3.msra.mxu0 %v870_v46  ;;  %2814 = vmatprep.mubr.msk.f32.mxu0 %vm3290_vm0, %v3291_v1 }
 0x4db   : > { %2817 = vmatprep.subr.mxu0 %v3291_v1 }
 0x4e1   : > { %2815 = vmatmul.mubr.msk.f32.vlgmr.msra.gmra.mrb[6].mxu0 %vm665_vm3, %v707_v52 }
 0x4e2   : > { %2818 = vmatpush3.msra.mxu0 %v949_v53  ;;  %2819 = vmatprep.mubr.msk.f32.mxu0 %vm3290_vm0, %v3291_v1 }
 0x4e3   : > { %3029 = vmatprep.subr.bf16.mxu0 %v3289_v0 }
 0x4e9   : > { %2820 = vmatmul.mubr.msk.f32.vlgmr.msra.gmra.mrb[6].mxu0 %vm665_vm3, %v709_v58 }
 0x4ea   : > { %2871 = vmatprep.mubr.msk.f32.mxu0 %vm3290_vm0, %v3291_v1 }
 0x5bc   : > { %v1019_v50 = vpop.f32.mrb[6].mxu0 }
 0x5bd   : > { %v2821_v59 = vpop.f32.mrb[7].mxu0  ;;  %2831 = vmatmul.mubr.msk.f32.vlgmr.msra.gmra.mrb[8].mxu1 %vm329_vm2, %v1019_v50 }
 0x5be   : > { %2841 = vmatprep.mubr.msk.f32.mxu1 %vm3290_vm0, %v3291_v1  ;;  %3013 = vmatpush3.bf16.msra.mxu1 %v3012_v10 }
 0x5bf   : > { %3014 = vmatprep.subr.bf16.mxu1 %v3289_v0 }
 0x5c2   : > { %3016 = vmatpush3.bf16.msra.mxu1 %v3015_v13  ;;  %v2606_v13 = vld [vmem:[#allocation2 + $0x150] ss:$0 sm:$0xff] }
 0x5c3   : > { %3017 = vmatprep.subr.bf16.mxu1 %v3289_v0 }
 0x690   : > { %v1102_v60 = vpop.f32.mrb[8].mxu1 }
 0x691   : > { %v1103_v61 = vadd.f32 %v2598_v57, %v1102_v60  ;;  %v2832_v62 = vpop.f32.mrb[9].mxu1  ;;  %v1329_v57 = vld [vmem:[#allocation2 + $0x160] sm:$0xff]  ;;  %v1330_v60 = vld [vmem:[#allocation2 + $0x168] sm:$0xff] }
 0x692   : > { %v1490_v62 = vld [vmem:[#allocation2 + $0x1b0] sm:$0xff] }
 0x693   : > { %v1106_v63 = vadd.f32 %v1103_v61, %v3414_v31  ;;  %v3030_v61 = vpack.c.bf16 %v1330_v60, %v1329_v57 }
 0x695   : > { %v1109_v2 = vsel %vm329_vm2, %v1106_v63, 0.0  ;;  %3031 = vmatpush3.bf16.msra.mxu0 %v3030_v61 }
 0x696   : > { %1110 = vadd.xlane.f32.xlu0 %v1109_v2  ;;  %3032 = vmatprep.subr.bf16.mxu0 %v3289_v0 }
 0x723   : > { %v1111_v3 = vpop.xlane.xlu0 %1110 }
 0x724   : > { %v1113_v4 = vmul.f32 0.03125, %v1111_v3  ;;  %v1331_v3 = vld [vmem:[#allocation2 + $0x170] sm:$0xff] }
 0x726   : > { %v1114_v5 = vsub.f32 %v1106_v63, %v1113_v4  ;;  %v1491_v63 = vld [vmem:[#allocation2 + $0x1b8] sm:$0xff] }
 0x727   : > { %v3042_v2 = vpack.c.bf16 %v1491_v63, %v1490_v62  ;;  %v1332_v4 = vld [vmem:[#allocation2 + $0x178] sm:$0xff] }
 0x728   : > { %v1115_v6 = vmul.f32 %v1114_v5, %v1114_v5 }
 0x72a   : > { %v1116_v7 = vsel %vm329_vm2, %v1115_v6, 0.0  ;;  %v3033_v6 = vpack.c.bf16 %v1332_v4, %v1331_v3 }
 0x72b   : > { %1117 = vadd.xlane.f32.xlu1 %v1116_v7  ;;  %v1493_v7 = vld [vmem:[#allocation2 + $0x1c8] sm:$0xff] }
 0x72c   : > { %3034 = vmatpush3.bf16.msra.mxu0 %v3033_v6 }
 0x72d   : > { %3035 = vmatprep.subr.bf16.mxu0 %v3289_v0 }
 0x7b8   : > { %v1118_v31 = vpop.xlane.xlu1 %1117 }
 0x7b9   : > { %v1119_v14 = vmul.f32 0.03125, %v1118_v31 }
 0x7bb   : > { %v1120_v15 = vadd.f32 1e-05, %v1119_v14  ;;  %v1411_v14 = vld [vmem:[#allocation2 + $0x188] sm:$0xff] }
 0x7bd   : > { %3162 = vrsqrt.f32 %v1120_v15  ;;  %v1412_v15 = vld [vmem:[#allocation2 + $0x190] sm:$0xff] }
 0x7c7   : > { %v3163_v16 = vpop.eup %3162 }
 0x7c8   : > { %v1122_v18 = vmul.f32 %v3163_v16, %v1114_v5  ;;  %v1492_v5 = vld [vmem:[#allocation2 + $0x1c0] sm:$0xff]  ;;  %v2607_v16 = vld [vmem:[#allocation2 + $0x158] ss:$0 sm:$0xff] }
 0x7c9   : > { %v3045_v8 = vpack.c.bf16 %v1493_v7, %v1492_v5 }
 0x7ca   : > { %v1127_v22 = vmul.f32 %v2600_v17, %v1122_v18  ;;  %v3036_v18 = vpack.c.bf16 %v1412_v15, %v1411_v14 }
 0x7cc   : > { %v1132_v24 = vadd.f32 %v2601_v21, %v1127_v22  ;;  %v1414_v21 = vld [vmem:[#allocation2 + $0x1a0] sm:$0xff] }
 0x7cd   : > { %v3039_v22 = vpack.c.bf16 %v1414_v21, %v1413_v20 }
 0x7ce   : > { %2842 = vmatmul.mubr.msk.f32.vlgmr.msra.gmra.mrb[10].mxu1 %vm329_vm2, %v1132_v24 }
 0x7cf   : > { %3019 = vmatpush3.bf16.msra.mxu1 %v3018_v23  ;;  %2860 = vmatprep.mubr.msk.f32.mxu1 %vm3290_vm0, %v3291_v1  ;;  %v2608_v23 = vld [vmem:[#allocation2 + $0x180] ss:$0 sm:$0xff] }
 0x7d0   : > { %3020 = vmatprep.subr.bf16.mxu1 %v3289_v0 }
 0x7d3   : > { %3022 = vmatpush3.bf16.msra.mxu1 %v3021_v27 }
 0x7d4   : > { %3023 = vmatprep.subr.bf16.mxu1 %v3289_v0 }
 0x7d7   : > { %3025 = vmatpush3.bf16.msra.mxu1 %v3024_v30 }
 0x7d8   : > { %3026 = vmatprep.subr.bf16.mxu1 %v3289_v0 }
 0x7db   : > { %3028 = vmatpush3.bf16.msra.mxu1 %v3027_v34  ;;  %v2610_v34 = vld [vmem:[#allocation2 + $0x1a8] ss:$0 sm:$0xff] }
 0x7dc   : > { %3041 = vmatprep.subr.bf16.mxu1 %v3289_v0 }
 0x8a1   : > { %v1211_v37 = vpop.f32.mrb[10].mxu1 }
 0x8a2   : > { %v1212_v38 = vadd.f32 %v2602_v35, %v1211_v37  ;;  %v2843_v39 = vpop.f32.mrb[11].mxu1 }
 0x8a4   : > { %v1215_v40 = vmax.f32 %v1212_v38, 0.0 }
 0x8a6   : > { %2861 = vmatmul.mubr.msk.f32.vlgmr.msra.gmra.mrb[12].mxu1 %vm1229_vm4, %v1215_v40 }
 0x8a7   : > { %2893 = vmatprep.mubr.msk.f32.mxu1 %vm3290_vm0, %v3291_v1  ;;  %3043 = vmatpush3.bf16.msra.mxu1 %v3042_v2 }
 0x8a8   : > { %3044 = vmatprep.subr.bf16.mxu1 %v3289_v0 }
 0x8ab   : > { %3046 = vmatpush3.bf16.msra.mxu1 %v3045_v8 }
 0x8ac   : > { %2904 = vmatprep.subr.mxu1 %v3291_v1 }
 0x979   : > { %v1299_v44 = vpop.f32.mrb[12].mxu1 }
 0x97a   : > { %v1300_v45 = vadd.f32 %v2604_v41, %v1299_v44  ;;  %v2862_v46 = vpop.f32.mrb[13].mxu1 }
 0x97c   : > { %v1303_v48 = vadd.f32 %v1300_v45, %v1132_v24  ;;  %v2612_v24 = vld [vmem:[#allocation2 + $0x1d0] ss:$0 sm:$0xff] }
 0x97e   : > { %v1306_v52 = vsel %vm329_vm2, %v1303_v48, 0.0 }
 0x97f   : > { %1307 = vadd.xlane.f32.xlu0 %v1306_v52 }
 0xa0c   : > { %v1308_v53 = vpop.xlane.xlu0 %1307 }
 0xa0d   : > { %v1309_v56 = vmul.f32 0.03125, %v1308_v53 }
 0xa0f   : > { %v1310_v58 = vsub.f32 %v1303_v48, %v1309_v56 }
 0xa11   : > { %v1311_v50 = vmul.f32 %v1310_v58, %v1310_v58 }
 0xa13   : > { %v1312_v59 = vsel %vm329_vm2, %v1311_v50, 0.0 }
 0xa14   : > { %1313 = vadd.xlane.f32.xlu1 %v1312_v59 }
 0xaa1   : > { %v1314_v9 = vpop.xlane.xlu1 %1313 }
 0xaa2   : > { %v1315_v10 = vmul.f32 0.03125, %v1314_v9 }
 0xaa4   : > { %v1316_v11 = vadd.f32 1e-05, %v1315_v10  ;;  %v2015_v10 = vld [vmem:[#allocation2 + $0x1d8] sm:$0xff] }
 0xaa6   : > { %3164 = vrsqrt.f32 %v1316_v11  ;;  %v2016_v11 = vld [vmem:[#allocation2 + $0x1e0] sm:$0xff] }
 0xab0   : > { %v3165_v12 = vpop.eup %3164 }
 0xab1   : > { %v1318_v31 = vmul.f32 %v3165_v12, %v1310_v58  ;;  %v2017_v12 = vld [vmem:[#allocation2 + $0x1e8] sm:$0xff] }
 0xab3   : > { %v1323_v17 = vmul.f32 %v2606_v13, %v1318_v31  ;;  %v3048_v13 = vpack.c.bf16 %v2016_v11, %v2015_v10  ;;  %v2018_v31 = vld [vmem:[#allocation2 + $0x1f0] sm:$0xff] }
 0xab4   : > { %v3051_v14 = vpack.c.bf16 %v2018_v31, %v2017_v12  ;;  %v2629_v31 = vld [vmem:[#allocation2 + $0x278] ss:$0 sm:$0xff] }
 0xab5   : > { %v3527_v19 = vadd.f32 %v2607_v16, %v1323_v17 }
 0xab7   : > { %2872 = vmatmul.mubr.msk.f32.vlgmr.msra.gmra.mrb[8].mxu0 %vm329_vm2, %v3527_v19  ;;  %2894 = vmatmul.mubr.msk.f32.vlgmr.msra.gmra.mrb[14].mxu1 %vm329_vm2, %v3527_v19 }
 0xab8   : > { %3037 = vmatpush3.bf16.msra.mxu0 %v3036_v18  ;;  %2882 = vmatprep.mubr.msk.f32.mxu0 %vm3290_vm0, %v3291_v1 }
 0xab9   : > { %3038 = vmatprep.subr.bf16.mxu0 %v3289_v0  ;;  %2906 = vmatprep.mubr.msk.f32.mxu1 %vm3290_vm0, %v3291_v1 }
 0xabc   : > { %3040 = vmatpush3.bf16.msra.mxu0 %v3039_v22 }
 0xabf   : > { %2883 = vmatmul.mubr.msk.f32.vlgmr.msra.gmra.mrb[10].mxu0 %vm329_vm2, %v3527_v19 }
 0xb8a   : > { %v1407_v25 = vpop.f32.mrb[8].mxu0  ;;  %v1565_v26 = vpop.f32.mrb[14].mxu1 }
 0xb8b   : > { %v1408_v27 = vadd.f32 %v2608_v23, %v1407_v25  ;;  %v3540_v28 = vadd.f32 %v2612_v24, %v1565_v26  ;;  %v2873_v29 = vpop.f32.mrb[9].mxu0  ;;  %v2895_v30 = vpop.f32.mrb[15].mxu1 }
 0xb8d   : > { %v1569_v32 = vmul.f32 %v1408_v27, %v3428_v42  ;;  %v1718_v33 = vmul.f32 %v3540_v28, %v3448_v55  ;;  %v1570_v39 = vmul.f32 %v1408_v27, %v3430_v47  ;;  %v1571_v42 = vmul.f32 %v1408_v27, %v3434_v49 }
 0xb8e   : > { %v1572_v55 = vmul.f32 %v1408_v27, %v3443_v54  ;;  %v1717_v21 = vmul.f32 %v3540_v28, %v3472_v36  ;;  %v1865_v25 = vmul.f32 %v3540_v28, %v3482_v43  ;;  %v1940_v27 = vmul.f32 %v3540_v28, %v3492_v51  ;;  %v2623_v51 = vld [vmem:[#allocation2 + $0x1f8] ss:$0 sm:$0xff] }
 0xb8f   : > { %2898 = vmatprep.mubr.msk.f32.mxu0 %vm329_vm2, %v1569_v32  ;;  %2905 = vmatpush3.msra.mxu1 %v1718_v33 }
 0xb90   : > { %2909 = vmatprep.subr.mxu1 %v3291_v1 }
 0xb92   : > { %v1486_v35 = vpop.f32.mrb[10].mxu0 }
 0xb93   : > { %v1487_v37 = vadd.f32 %v2610_v34, %v1486_v35  ;;  %v2884_v38 = vpop.f32.mrb[11].mxu0 }
 0xb95   : > { %2896 = vmatprep.subr.msk.mxu0 %vm329_vm2, %v1487_v37 }
 0xb96   : > { %2897 = vmatpush3.xpose.msk.msra.mxu0 %vm329_vm2, %v1487_v37 }
 0xb97   : > { %3047 = vmatprep.subr.bf16.mxu0 %v3289_v0 }
 0xb99   : > { %2899 = vmatmul.mubr.msk.f32.vlgmr.msra.gmra.mrb[12].mxu0 %vm329_vm2, %v1570_v39 }
 0xb9a   : > { %2901 = vmatprep.mubr.msk.f32.mxu0 %vm329_vm2, %v1571_v42  ;;  %3049 = vmatpush3.bf16.msra.mxu0 %v3048_v13 }
 0xb9b   : > { %3050 = vmatprep.subr.bf16.mxu0 %v3289_v0 }
 0xb9d   : > { %2902 = vmatmul.mubr.msk.f32.gmra.mrb[14].mxu0 %vm329_vm2, %v1572_v55 }
 0xb9e   : > { %2932 = vmatprep.mubr.msk.f32.mxu0 %vm3290_vm0, %v3291_v1  ;;  %3052 = vmatpush3.bf16.msra.mxu0 %v3051_v14 }
 0xb9f   : > { %3053 = vmatprep.subr.bf16.mxu0 %v3289_v0 }
 0xc6c   : > { %v2900_v40 = vpop.f32.mrb[12].mxu0 }
 0xc6d   : > { %v1654_v41 = vpop.f32.mrb[13].mxu0  ;;  %v1676_v44 = vsel %vm665_vm3, %v2900_v40, -inf }
 0xc6e   : > { %1677 = vmax.xlane.f32.xlu0 %v1676_v44  ;;  %v1673_v47 = vsel %vm665_vm3, %v1654_v41, -inf  ;;  %v2124_v44 = vld [vmem:[#allocation2 + $0x218] sm:$0xff] }
 0xc6f   : > { %1674 = vmax.xlane.f32.xlu1 %v1673_v47 }
 0xc70   : > { %v2903_v49 = vpop.f32.mrb[14].mxu0 }
 0xc71   : > { %v1664_v45 = vpop.f32.mrb[15].mxu0  ;;  %v1682_v46 = vsel %vm665_vm3, %v2903_v49, -inf }
 0xc72   : > { %v1679_v48 = vsel %vm665_vm3, %v1664_v45, -inf }
 0xc73   : > { %1683 = vmax.xlane.f32.xlu1 %v1682_v46  ;;  %1680 = vmax.xlane.f32.xlu0 %v1679_v48 }
 0xcfb   : > { %v1678_v54 = vpop.xlane.xlu0 %1677 }
 0xcfc   : > { %v1686_v52 = vsub.f32 %v2900_v40, %v1678_v54  ;;  %v1675_v53 = vpop.xlane.xlu1 %1674 }
 0xcfd   : > { %v1685_v56 = vsub.f32 %v1654_v41, %v1675_v53  ;;  %v2123_v41 = vld [vmem:[#allocation2 + $0x210] sm:$0xff]  ;;  %v2625_v53 = vld [vmem:[#allocation2 + $0x200] ss:$0 sm:$0xff] }
 0xcfe   : > { %v1691_v58 = vmul.f32 1.442695, %v1686_v52  ;;  %v3054_v47 = vpack.c.bf16 %v2124_v44, %v2123_v41 }
 0xcff   : > { %v1689_v50 = vmul.f32 1.442695, %v1685_v56 }
 0xd00   : > { %3166 = vpow2.f32 %v1691_v58  ;;  %v1684_v59 = vpop.xlane.xlu1 %1683  ;;  %v1681_v57 = vpop.xlane.xlu0 %1680  ;;  %v2206_v58 = vld [vmem:[#allocation2 + $0x238] sm:$0xff] }
 0xd01   : > { %3168 = vpow2.f32 %v1689_v50  ;;  %v1688_v60 = vsub.f32 %v2903_v49, %v1684_v59  ;;  %v1687_v61 = vsub.f32 %v1664_v45, %v1681_v57  ;;  %v2125_v49 = vld [vmem:[#allocation2 + $0x220] sm:$0xff]  ;;  %v2126_v45 = vld [vmem:[#allocation2 + $0x228] sm:$0xff] }
 0xd02   : > { %v3057_v46 = vpack.c.bf16 %v2126_v45, %v2125_v49  ;;  %v2207_v50 = vld [vmem:[#allocation2 + $0x240] sm:$0xff]  ;;  %v2626_v59 = vld [vmem:[#allocation2 + $0x208] ss:$0 sm:$0xff] }
 0xd03   : > { %v1695_v62 = vmul.f32 1.442695, %v1688_v60  ;;  %v1693_v63 = vmul.f32 1.442695, %v1687_v61  ;;  %v3060_v60 = vpack.c.bf16 %v2207_v50, %v2206_v58 }
 0xd05   : > { %3170 = vpow2.f32 %v1695_v62  ;;  %v2208_v62 = vld [vmem:[#allocation2 + $0x248] sm:$0xff] }
 0xd06   : > { %3172 = vpow2.f32 %v1693_v63  ;;  %v2209_v63 = vld [vmem:[#allocation2 + $0x250] sm:$0xff] }
 0xd0a   : > { %v3167_v2 = vpop.eup %3166 }
 0xd0b   : > { %v3169_v3 = vpop.eup %3168  ;;  %v1700_v4 = vsel %vm665_vm3, %v3167_v2, 0.0 }
 0xd0c   : > { %1701 = vadd.xlane.f32.xlu0 %v1700_v4  ;;  %v1697_v5 = vsel %vm665_vm3, %v3169_v3, 0.0  ;;  %v2211_v4 = vld [vmem:[#allocation2 + $0x260] sm:$0xff] }
 0xd0d   : > { %1698 = vadd.xlane.f32.xlu1 %v1697_v5 }
 0xd0f   : > { %v3171_v6 = vpop.eup %3170 }
 0xd10   : > { %v3173_v7 = vpop.eup %3172  ;;  %v1706_v8 = vsel %vm665_vm3, %v3171_v6, 0.0 }
 0xd11   : > { %1707 = vadd.xlane.f32.xlu1 %v1706_v8  ;;  %v1703_v9 = vsel %vm665_vm3, %v3173_v7, 0.0 }
 0xd12   : > { %1704 = vadd.xlane.f32.xlu0 %v1703_v9  ;;  %v2627_v9 = vld [vmem:[#allocation2 + $0x230] ss:$0 sm:$0xff] }
 0xd99   : > { %v1702_v15 = vpop.xlane.xlu0 %1701 }
 0xd9a   : > { %3174 = vrcp.f32 %v1702_v15  ;;  %v1699_v16 = vpop.xlane.xlu1 %1698 }
 0xd9b   : > { %3176 = vrcp.f32 %v1699_v16 }
 0xd9e   : > { %v1708_v24 = vpop.xlane.xlu1 %1707 }
 0xd9f   : > { %v1705_v20 = vpop.xlane.xlu0 %1704 }
 0xda0   : > { %3178 = vrcp.f32 %v1705_v20 }
 0xda1   : > { %3180 = vrcp.f32 %v1708_v24 }
 0xda4   : > { %v3175_v17 = vpop.eup %3174 }
 0xda5   : > { %v1712_v18 = vmul.f32 %v3175_v17, %v3167_v2  ;;  %v3177_v22 = vpop.eup %3176  ;;  %v3063_v2 = vpack.c.bf16 %v2209_v63, %v2208_v62 }
 0xda6   : > { %v1710_v23 = vmul.f32 %v3177_v22, %v3169_v3  ;;  %v2210_v3 = vld [vmem:[#allocation2 + $0x258] sm:$0xff] }
 0xda7   : > { %2907 = vmatmul.mubr.msk.f32.vlgmr.msra.gmra.mrb[16].mxu1 %vm665_vm3, %v1712_v18  ;;  %v3066_v5 = vpack.c.bf16 %v2211_v4, %v2210_v3 }
 0xda8   : > { %2910 = vmatpush3.msra.mxu1 %v1717_v21  ;;  %2911 = vmatprep.mubr.msk.f32.mxu1 %vm3290_vm0, %v3291_v1 }
 0xda9   : > { %2914 = vmatprep.subr.mxu1 %v3291_v1 }
 0xdaa   : > { %v3179_v36 = vpop.eup %3178 }
 0xdab   : > { %v1714_v26 = vmul.f32 %v3179_v36, %v3173_v7  ;;  %v3181_v43 = vpop.eup %3180  ;;  %v2213_v7 = vld [vmem:[#allocation2 + $0x270] sm:$0xff]  ;;  %v2319_v36 = vld [vmem:[#allocation2 + $0x298] sm:$0xff] }
 0xdac   : > { %v1716_v29 = vmul.f32 %v3181_v43, %v3171_v6  ;;  %v2212_v6 = vld [vmem:[#allocation2 + $0x268] sm:$0xff] }
 0xdad   : > { %v3069_v8 = vpack.c.bf16 %v2213_v7, %v2212_v6  ;;  %v2321_v43 = vld [vmem:[#allocation2 + $0x2a8] sm:$0xff] }
 0xdaf   : > { %2912 = vmatmul.mubr.msk.f32.vlgmr.msra.gmra.mrb[16].mxu1 %vm665_vm3, %v1710_v23 }
 0xdb0   : > { %2915 = vmatpush3.msra.mxu1 %v1865_v25  ;;  %2916 = vmatprep.mubr.msk.f32.mxu1 %vm3290_vm0, %v3291_v1  ;;  %v2318_v25 = vld [vmem:[#allocation2 + $0x290] sm:$0xff] }
 0xdb1   : > { %2919 = vmatprep.subr.mxu1 %v3291_v1 }
 0xdb7   : > { %2917 = vmatmul.mubr.msk.f32.vlgmr.msra.gmra.mrb[16].mxu1 %vm665_vm3, %v1714_v26  ;;  %v3072_v26 = vpack.c.bf16 %v2319_v36, %v2318_v25 }
 0xdb8   : > { %2920 = vmatpush3.msra.mxu1 %v1940_v27  ;;  %2921 = vmatprep.mubr.msk.f32.mxu1 %vm3290_vm0, %v3291_v1  ;;  %v2320_v27 = vld [vmem:[#allocation2 + $0x2a0] sm:$0xff] }
 0xdb9   : > { %3071 = vmatprep.subr.bf16.mxu1 %v3289_v0 }
 0xdbf   : > { %2922 = vmatmul.mubr.msk.f32.vlgmr.msra.gmra.mrb[16].mxu1 %vm665_vm3, %v1716_v29  ;;  %v3075_v29 = vpack.c.bf16 %v2321_v43, %v2320_v27 }
 0xdc0   : > { %2973 = vmatprep.mubr.msk.f32.mxu1 %vm3290_vm0, %v3291_v1  ;;  %3073 = vmatpush3.bf16.msra.mxu1 %v3072_v26 }
 0xdc1   : > { %3074 = vmatprep.subr.bf16.mxu1 %v3289_v0 }
 0xdc4   : > { %3076 = vmatpush3.bf16.msra.mxu1 %v3075_v29 }
 0xdc5   : > { %2976 = vmatprep.subr.mxu1 %v3291_v1 }
 0xe92   : > { %v2010_v30 = vpop.f32.mrb[16].mxu1 }
 0xe93   : > { %v2923_v32 = vpop.f32.mrb[17].mxu1  ;;  %2933 = vmatmul.mubr.msk.f32.vlgmr.msra.gmra.mrb[16].mxu0 %vm329_vm2, %v2010_v30 }
 0xe94   : > { %2943 = vmatprep.mubr.msk.f32.mxu0 %vm3290_vm0, %v3291_v1  ;;  %3055 = vmatpush3.bf16.msra.mxu0 %v3054_v47  ;;  %v2401_v47 = vld [vmem:[#allocation2 + $0x2b8] sm:$0x1] }
 0xe95   : > { %3056 = vmatprep.subr.bf16.mxu0 %v3289_v0 }
 0xe98   : > { %3058 = vmatpush3.bf16.msra.mxu0 %v3057_v46 }
 0xe99   : > { %3059 = vmatprep.subr.bf16.mxu0 %v3289_v0 }
 0xf66   : > { %v2093_v28 = vpop.f32.mrb[16].mxu0 }
 0xf67   : > { %v2094_v33 = vadd.f32 %v2623_v51, %v2093_v28  ;;  %v2934_v34 = vpop.f32.mrb[17].mxu0 }
 0xf69   : > { %v2097_v35 = vadd.f32 %v2094_v33, %v3527_v19  ;;  %v2631_v33 = vld [vmem:[#allocation2 + $0x280] ss:$0 sm:$0xff] }
 0xf6b   : > { %v2100_v37 = vsel %vm329_vm2, %v2097_v35, 0.0 }
 0xf6c   : > { %2101 = vadd.xlane.f32.xlu0 %v2100_v37 }
 0xff9   : > { %v2102_v38 = vpop.xlane.xlu0 %2101 }
 0xffa   : > { %v2103_v39 = vmul.f32 0.03125, %v2102_v38 }
 0xffc   : > { %v2104_v42 = vsub.f32 %v2097_v35, %v2103_v39  ;;  %v2632_v35 = vld [vmem:[#allocation2 + $0x288] ss:$0 sm:$0xff]  ;;  %v3292_v39 = vmov 0  }
 0xffd   : > { %3145 = vset.pattern.permute.xlu0 %v3292_v39 }
 0xffe   : > { %v2105_v55 = vmul.f32 %v2104_v42, %v2104_v42 }
0x1000   : > { %v2106_v40 = vsel %vm329_vm2, %v2105_v55, 0.0 }
0x1001   : > { %2107 = vadd.xlane.f32.xlu1 %v2106_v40 }
0x108e   : > { %v2108_v19 = vpop.xlane.xlu1 %2107 }
0x108f   : > { %v2109_v48 = vmul.f32 0.03125, %v2108_v19 }
0x1091   : > { %v2110_v54 = vadd.f32 1e-05, %v2109_v48 }
0x1093   : > { %3182 = vrsqrt.f32 %v2110_v54 }
0x109d   : > { %v3183_v52 = vpop.eup %3182 }
0x109e   : > { %v2112_v56 = vmul.f32 %v3183_v52, %v2104_v42  ;;  %v2633_v42 = vld [vmem:[#allocation2 + $0x2b0] ss:$0 sm:$0xff] }
0x10a0   : > { %v2117_v57 = vmul.f32 %v2625_v53, %v2112_v56 }
0x10a2   : > { %v2122_v61 = vadd.f32 %v2626_v59, %v2117_v57 }
0x10a4   : > { %2944 = vmatmul.mubr.msk.f32.vlgmr.msra.gmra.mrb[18].mxu0 %vm329_vm2, %v2122_v61 }
0x10a5   : > { %3061 = vmatpush3.bf16.msra.mxu0 %v3060_v60  ;;  %2962 = vmatprep.mubr.msk.f32.mxu0 %vm3290_vm0, %v3291_v1 }
0x10a6   : > { %3062 = vmatprep.subr.bf16.mxu0 %v3289_v0 }
0x10a9   : > { %3064 = vmatpush3.bf16.msra.mxu0 %v3063_v2 }
0x10aa   : > { %3065 = vmatprep.subr.bf16.mxu0 %v3289_v0 }
0x10ad   : > { %3067 = vmatpush3.bf16.msra.mxu0 %v3066_v5 }
0x10ae   : > { %3068 = vmatprep.subr.bf16.mxu0 %v3289_v0  ;;  %v2402_v0 = vld [vmem:[#allocation2 + $0x2c0] sm:$0x1] }
0x10b1   : > { %3070 = vmatpush3.bf16.msra.mxu0 %v3069_v8 }
0x1177   : > { %v2201_v10 = vpop.f32.mrb[18].mxu0 }
0x1178   : > { %v2202_v11 = vadd.f32 %v2627_v9, %v2201_v10  ;;  %v2945_v12 = vpop.f32.mrb[19].mxu0 }
0x117a   : > { %v2205_v13 = vmax.f32 %v2202_v11, 0.0 }
0x117c   : > { %2963 = vmatmul.mubr.msk.f32.vlgmr.msra.gmra.mrb[20].mxu0 %vm1229_vm4, %v2205_v13 }
0x124f   : > { %v2288_v14 = vpop.f32.mrb[20].mxu0 }
0x1250   : > { %v2289_v15 = vadd.f32 %v2629_v31, %v2288_v14  ;;  %v2964_v16 = vpop.f32.mrb[21].mxu0 }
0x1252   : > { %v2292_v17 = vadd.f32 %v2289_v15, %v2122_v61 }
0x1254   : > { %v2295_v18 = vsel %vm329_vm2, %v2292_v17, 0.0 }
0x1255   : > { %2296 = vadd.xlane.f32.xlu0 %v2295_v18 }
0x126b   : > { %2405 = vperm.xlu0 %3145, %v2402_v0  }
0x12e2   : > { %v2297_v20 = vpop.xlane.xlu0 %2296 }
0x12e3   : > { %v2298_v21 = vmul.f32 0.03125, %v2297_v20 }
0x12e5   : > { %v2299_v22 = vsub.f32 %v2292_v17, %v2298_v21 }
0x12e7   : > { %v2300_v23 = vmul.f32 %v2299_v22, %v2299_v22 }
0x12e9   : > { %v2301_v24 = vsel %vm329_vm2, %v2300_v23, 0.0 }
0x12ea   : > { %2302 = vadd.xlane.f32.xlu1 %v2301_v24  ;;  %v2406_v49 = vpop.permute.xlu0 %2405 }
0x1377   : > { %v2303_v30 = vpop.xlane.xlu1 %2302 }
0x1378   : > { %v2304_v32 = vmul.f32 0.03125, %v2303_v30 }
0x137a   : > { %v2305_v51 = vadd.f32 1e-05, %v2304_v32 }
0x137c   : > { %3184 = vrsqrt.f32 %v2305_v51 }
0x1386   : > { %v3185_v28 = vpop.eup %3184 }
0x1387   : > { %v2307_v34 = vmul.f32 %v3185_v28, %v2299_v22 }
0x1389   : > { %v2312_v37 = vmul.f32 %v2631_v33, %v2307_v34 }
0x138b   : > { %v2317_v38 = vadd.f32 %v2632_v35, %v2312_v37 }
0x138d   : > { %2974 = vmatmul.mubr.msk.f32.vlgmr.msra.gmra.mrb[18].mxu1 %vm329_vm2, %v2317_v38 }
0x138e   : > { %2978 = vmatprep.mubr.msk.f32.mxu1 %vm3290_vm0, %v3291_v1 }
0x1460   : > { %v2396_v55 = vpop.f32.mrb[18].mxu1 }
0x1461   : > { %v2397_v40 = vadd.f32 %v2633_v42, %v2396_v55  ;;  %v2975_v41 = vpop.f32.mrb[19].mxu1 }
0x1463   : > { %v2400_v44 = vmax.f32 %v2397_v40, 0.0 }
0x1465   : > { %2977 = vmatpush3.xpose.msk.msra.mxu1 %vm161_vm1, %v2400_v44 }
0x1468   : > { %2979 = vmatmul.mubr.msk.f32.vlgmr.msra.gmra.mrb[20].mxu1 %vm161_vm1, %v2401_v47 }
0x153b   : > { %v2480_v45 = vpop.f32.mrb[20].mxu1 }
0x153c   : > { %v2481_v46 = vadd.f32 %v2480_v45, %v2406_v49  ;;  %v2980_v1 = vpop.f32.mrb[21].mxu1 }
0x153e   : > { %v2484_v19 = vsub.f32 0.0, %v2481_v46 }
0x1540   : > { %v2485_v48 = vmul.f32 1.442695, %v2484_v19 }
0x1542   : > { %3186 = vpow2.f32 %v2485_v48 }
0x154c   : > { %v3187_v54 = vpop.eup %3186 }
0x154d   : > { %v2487_v52 = vadd.f32 1.0, %v3187_v54 }
0x154f   : > { %3188 = vrcp.f32 %v2487_v52 }
0x1559   : > { %v3189_v53 = vpop.eup %3188 }
0x155a   : > { %2491 = vst.msk [vmem:[%s148_s25] sm:$0x1] %vm2490_vm5, %v3189_v53 }
0x155b   : > { %3231 = shalt.err (!%p3228_p7)
}
0x155c   : > { %s3232_s6 = scalar_lea.hbm %s3618_s29, 16  ;;  %s3236_s14 = scalar_lea.hbm %s3662_s2, 32 }
0x155d   : > { %p3233_p8 = scmp.ne.s32.totalorder %s3618_s29, %s3232_s6  ;;  %p3237_p1 = scmp.lt.u32.totalorder %s3618_s29, %s3662_s2 }
0x155e   : > { %p3238_p0 = scmp.lt.u32.totalorder %s3236_s14, %s3232_s6  ;;  %p3240_p6 = scmp.lt.u32.totalorder %s3232_s6, %s3618_s29 }
0x155f   : > { %p3234_p11 = pnand %p3233_p8, %p3673_p9 }
0x1560   : > { %p3239_p5 = por %p3238_p0, %p3237_p1 }
0x1561   : > { %p3235_p13 = pneg %p3234_p11 }
0x1562   : > { %p3241_p10 = por %p3240_p6, %p3239_p5 }
0x1564   : > { %p3242_p12 = pnand %p3241_p10, %p3235_p13 }
0x1566   : > { %3245 = shalt.err (!%p3242_p12)
}
0x1567   : > { %3093 = dma.vmem_to_hbm [thread:$0]  (%p3673_p9), %s3620_s26, 16, %s3618_s29, %s2493_s30  }
0x1568 PF: > { %p3105_p2 = scmp.ge.s32.totalorder %s3284_s12, 2  ;;  %s2517_s21 = sand.u32 1, %s3272_s9  }
0x1569   : > { %p3674_p3 = scmp.ne.s32.totalorder %s3667_s20, 0  ;;  %s2518_s22 = scalar_lea.sflag [#allocation4], %s2517_s21 }
0x156b   : > { %p3100_p4 = pnand %p3105_p2, %p3674_p3 }
0x156d   : > { %3267 = dma.done.wait (!%p3100_p4), %s2518_s22, 16  }
0x156e   : > { %3269 = vsyncadd (!%p3100_p4), %s2518_s22, 4294967280  ;;  %p13_p7 = scmp.ge.s32.totalorder %s3334_s15, 4   ;;  %s3675_s9 = smov %s3276_s10 }
0x156f   : > { %s3676_s10 = smov %s3280_s11  ;;  %s3677_s11 = smov %s3345_s18 }
0x1570   : > { %s3678_s12 = smov %s3334_s15  ;;  %15 = sbr.rel (!%p13_p7) target bundleno = 4 (0x4), region = 68 }
0x1577   :  { %2522 = vsyncpa [#allocation3], 1 }
0x1578   :  { %2524 = vsyncpa [#allocation3 + $0x1], 1 }
0x1579   :  { %2525 = vsyncpa [#allocation4], 1 }
0x157a   :  { %2527 = vsyncpa [#allocation4 + $0x1], 1 }

</bundles_post_ra>
